<compile_context>
chip_gen: v6e
topology: v6e:2x2x1
jax: 0.10.0
libtpu: 0.0.40
codegen_flags: <defaults>
</compile_context>

<pallas_src>
import functools

import jax
import jax.numpy as jnp
import numpy as np
from jax.experimental import pallas as pl
from jax.experimental.pallas import tpu as pltpu


# ----------------------------------------------------------------------------- kernel
def _attn_prop_kernel(x_ref, s_ref,
                      wq_ref, bq_ref, wk_ref, bk_ref, wv_ref, bv_ref,
                      wm_ref, bm_ref, w1x_ref, w1m_ref, b1_ref, w2_ref, b2_ref,
                      o_ref, *, num_heads, head_dim, mxu_dtype):
    f32 = jnp.float32
    Bt, N, D = x_ref.shape
    M = s_ref.shape[1]

    x = x_ref[...].astype(f32)                      # (Bt, N, D)
    xf = x.reshape(Bt * N, D)                       # merge leading dims (cheap, lane dim kept)
    sf = s_ref[...].astype(f32).reshape(Bt * M, D)
    xc = xf.astype(mxu_dtype)
    sc = sf.astype(mxu_dtype)

    # Multi-head attention with the merge Linear folded into the head loop.
    msg = jnp.zeros((Bt * N, D), f32)
    for h in range(num_heads):                      # static unroll over heads
        # per-head projections (scale already folded into wq/bq)
        q = jnp.dot(xc, wq_ref[h], preferred_element_type=f32) + bq_ref[h]   # (Bt*N, hd)
        k = jnp.dot(sc, wk_ref[h], preferred_element_type=f32) + bk_ref[h]   # (Bt*M, hd)
        v = jnp.dot(sc, wv_ref[h], preferred_element_type=f32) + bv_ref[h]   # (Bt*M, hd)
        qb = q.reshape(Bt, N, head_dim)
        kb = k.reshape(Bt, M, head_dim)
        vb = v.reshape(Bt, M, head_dim)

        scores = jnp.einsum('bnd,bmd->bnm', qb.astype(mxu_dtype), kb.astype(mxu_dtype),
                            preferred_element_type=f32)                      # (Bt, N, M)
        scores = scores - jnp.max(scores, axis=-1, keepdims=True)
        e = jnp.exp(scores)
        p = e * pl.reciprocal(jnp.sum(e, axis=-1, keepdims=True), approx=True)
        oh = jnp.einsum('bnm,bmd->bnd', p.astype(mxu_dtype), vb.astype(mxu_dtype),
                        preferred_element_type=f32)                          # (Bt, N, hd)
        # merge Linear, head h's row block: accumulate directly into the message
        msg = msg + jnp.dot(oh.reshape(Bt * N, head_dim).astype(mxu_dtype), wm_ref[h],
                            preferred_element_type=f32)
    msg = msg + bm_ref[...]

    # AttentionalPropagation.mlp on cat([x, message]) — concat removed by splitting w1.
    h1 = (jnp.dot(xc, w1x_ref[...], preferred_element_type=f32)
          + jnp.dot(msg.astype(mxu_dtype), w1m_ref[...], preferred_element_type=f32)
          + b1_ref[...])
    h1 = jnp.maximum(h1, 0.0)
    delta = jnp.dot(h1.astype(mxu_dtype), w2_ref[...], preferred_element_type=f32) + b2_ref[...]

    # residual update from AttentionalGNN.forward: descs = descs + delta
    o_ref[...] = (xf + delta).reshape(Bt, N, D).astype(o_ref.dtype)


# ----------------------------------------------------------------------------- wrapper
def _prep_params(p, d_model, num_heads, mxu_dtype):
    """Pre-split / pre-scale weights at trace time (outside the kernel)."""
    D, H = d_model, num_heads
    hd = D // H
    scale = 1.0 / (hd ** 0.5)
    wd = mxu_dtype

    def split_heads_w(w):   # (D, D) with head h in cols [h*hd:(h+1)*hd]  ->  (H, D, hd)
        return jnp.transpose(w.reshape(D, H, hd), (1, 0, 2))

    def split_heads_b(b):   # (1, D) -> (H, 1, hd)
        return jnp.transpose(b.reshape(1, H, hd), (1, 0, 2))

    return dict(
        wq=split_heads_w(p['wq'] * scale).astype(wd),   # fold 1/sqrt(hd) into Q proj
        bq=split_heads_b(p['bq'] * scale),
        wk=split_heads_w(p['wk']).astype(wd),
        bk=split_heads_b(p['bk']),
        wv=split_heads_w(p['wv']).astype(wd),
        bv=split_heads_b(p['bv']),
        wm=p['wm'].reshape(H, hd, D).astype(wd),        # row block h of merge weight
        bm=p['bm'],
        w1x=p['w1'][:D].astype(wd),                     # acts on x
        w1m=p['w1'][D:].astype(wd),                     # acts on message
        b1=p['b1'],
        w2=p['w2'].astype(wd),
        b2=p['b2'],
    )


def _pick_block_batch(total_b, n, m, d, vmem_budget_bytes=8 * 1024 * 1024):
    """Biggest batch-block (divisor of total_b) under a VMEM budget, keeping >=2 grid steps."""
    per_item_f32 = (2 * n * d + m * d            # x block (in+out) + source block
                    + 3 * (n + 2 * m) * d        # q/k/v temps (upper bound over heads)
                    + n * m                      # one head's score tile
                    + n * d + n * 2 * d + n * d  # msg, h1, delta
                    ) * 4
    cap = max(1, vmem_budget_bytes // max(per_item_f32, 1))
    if total_b >= 2:
        cap = max(1, min(cap, total_b // 2))     # >=2 grid steps -> both v7x cores get work
    best = 1
    for cand in range(1, total_b + 1):
        if total_b % cand == 0 and cand <= cap:
            best = cand
    return best


def attentional_propagation(x, source, p, *, num_heads, block_b=None,
                            mxu_dtype=jnp.float32):
    BT, N, D = x.shape
    M = source.shape[1]
    hd = D // num_heads
    pp = _prep_params(p, D, num_heads, mxu_dtype)

    if block_b is None:
        block_b = _pick_block_batch(BT, N, M, D)
    assert BT % block_b == 0
    grid = (BT // block_b,)

    kernel = functools.partial(_attn_prop_kernel, num_heads=num_heads, head_dim=hd,
                               mxu_dtype=mxu_dtype)

    def full(arr):  # weights/biases: same full block every grid step
        nd = arr.ndim
        return pl.BlockSpec(arr.shape, lambda b, nd=nd: (0,) * nd)

    weight_order = ['wq', 'bq', 'wk', 'bk', 'wv', 'bv',
                    'wm', 'bm', 'w1x', 'w1m', 'b1', 'w2', 'b2']
    weight_args = [pp[k] for k in weight_order]

    in_specs = ([pl.BlockSpec((block_b, N, D), lambda b: (b, 0, 0)),   # x slab
                 pl.BlockSpec((block_b, M, D), lambda b: (b, 0, 0))]   # source slab
                + [full(w) for w in weight_args])
    out_specs = pl.BlockSpec((block_b, N, D), lambda b: (b, 0, 0))

    return pl.pallas_call(
        kernel,
        out_shape=jax.ShapeDtypeStruct((BT, N, D), x.dtype),
        grid=grid,
        in_specs=in_specs,
        out_specs=out_specs,
        compiler_params=pltpu.CompilerParams(dimension_semantics=("parallel",)),
    )(x, source, *weight_args)


def attentional_gnn(descs_0, descs_1, layer_params, names, *, num_heads,
                    mxu_dtype=jnp.float32):
    B = descs_0.shape[0]
    for p, name in zip(layer_params, names):
        if name == 'cross':
            src_0, src_1 = descs_1, descs_0
        elif name == 'self':
            src_0, src_1 = descs_0, descs_1
        else:
            raise RuntimeError('Illegal name: ' + name)
        if descs_0.shape == descs_1.shape and src_0.shape == src_1.shape:
            # shared weights -> fuse both descriptor sets into ONE pallas_call (B -> 2B)
            x_all = jnp.concatenate([descs_0, descs_1], axis=0)
            s_all = jnp.concatenate([src_0, src_1], axis=0)
            out = attentional_propagation(x_all, s_all, p, num_heads=num_heads,
                                          mxu_dtype=mxu_dtype)
            descs_0, descs_1 = out[:B], out[B:]
        else:  # ragged keypoint counts: fall back to two calls
            new_0 = attentional_propagation(descs_0, src_0, p, num_heads=num_heads,
                                            mxu_dtype=mxu_dtype)
            new_1 = attentional_propagation(descs_1, src_1, p, num_heads=num_heads,
                                            mxu_dtype=mxu_dtype)
            descs_0, descs_1 = new_0, new_1
    return descs_0, descs_1


# ----------------------------------------------------------------------------- params
def _linear(key, fan_in, fan_out):
    # Deterministic synthetic init (PyTorch-style uniform bound), not a checkpoint.
    bound = 1.0 / np.sqrt(fan_in)
    kw, kb = jax.random.split(key)
    w = jax.random.uniform(kw, (fan_in, fan_out), jnp.float32, -bound, bound)
    b = jax.random.uniform(kb, (1, fan_out), jnp.float32, -bound, bound)
    return w, b


def init_layer_params(key, d_model, num_heads):
    head_dim = d_model // num_heads
    ks = jax.random.split(key, 6)

    def multi_head_proj(kbase):
        ws, bs = [], []
        for h in range(num_heads):
            w, b = _linear(jax.random.fold_in(kbase, h), d_model, head_dim)
            ws.append(w)
            bs.append(b)
        return jnp.concatenate(ws, axis=1), jnp.concatenate(bs, axis=1)

    wq, bq = multi_head_proj(ks[0])
    wk, bk = multi_head_proj(ks[1])
    wv, bv = multi_head_proj(ks[2])
    wm, bm = _linear(ks[3], d_model, d_model)
    w1, b1 = _linear(ks[4], 2 * d_model, 2 * d_model)
    w2, b2 = _linear(ks[5], 2 * d_model, d_model)
    return dict(wq=wq, bq=bq, wk=wk, bk=bk, wv=wv, bv=bv,
                wm=wm, bm=bm, w1=w1, b1=b1, w2=w2, b2=b2)


# ----------------------------------------------------------------------------- reference
def _ref_prop(x, s, p, num_heads):
    B, N, D = x.shape
    M = s.shape[1]
    hd = D // num_heads
    q = (x @ p['wq'] + p['bq'][0]).reshape(B, N, num_heads, hd)
    k = (s @ p['wk'] + p['bk'][0]).reshape(B, M, num_heads, hd)
    v = (s @ p['wv'] + p['bv'][0]).reshape(B, M, num_heads, hd)
    scores = jnp.einsum('bnhd,bmhd->bhnm', q, k) / hd ** 0.5
    prob = jax.nn.softmax(scores, axis=-1)
    o = jnp.einsum('bhnm,bmhd->bnhd', prob, v).reshape(B, N, D)
    msg = o @ p['wm'] + p['bm'][0]
    cat = jnp.concatenate([x, msg], axis=-1)
    h1 = jax.nn.relu(cat @ p['w1'] + p['b1'][0])
    return x + (h1 @ p['w2'] + p['b2'][0])


# ----------------------------------------------------------------------------- main
if __name__ == "__main__":
    # params = {'layers': ['self','cross'], 'num_layer_reps': 1, 'd_model': 32,
    #           'num_heads': 4, 'norm': None}
    B, N, D, H = 2, 8, 32, 4
    names = ['self', 'cross'] * 1

    key = jax.random.PRNGKey(0)
    k0, k1, kp = jax.random.split(key, 3)
    descs_0 = jax.random.normal(k0, (B, N, D), jnp.float32)
    descs_1 = jax.random.normal(k1, (B, N, D), jnp.float32)
    layer_params = [init_layer_params(jax.random.fold_in(kp, i), D, H)
                    for i in range(len(names))]

    # mxu_dtype=jnp.bfloat16 recommended on v6e/v7x at compute-bound sizes; f32 here for
    # a tight numerical check at the tiny test shapes.
    out0, out1 = attentional_gnn(descs_0, descs_1, layer_params, names, num_heads=H,
                                 mxu_dtype=jnp.float32)
    jax.block_until_ready((out0, out1))

    # pure-JAX reference check (tolerance accounts for the approx. EUP reciprocal in softmax)
    r0, r1 = descs_0, descs_1
    for p, name in zip(layer_params, names):
        s0, s1 = (r1, r0) if name == 'cross' else (r0, r1)
        n0, n1 = _ref_prop(r0, s0, p, H), _ref_prop(r1, s1, p, H)
        r0, r1 = n0, n1
    np.testing.assert_allclose(np.asarray(out0), np.asarray(r0), rtol=2e-3, atol=2e-3)
    np.testing.assert_allclose(np.asarray(out1), np.asarray(r1), rtol=2e-3, atol=2e-3)

    print("KERNEL_OK")
</pallas_src>

<mosaic_0001>
module attributes {stable_mosaic.version = 11 : i64} {
  func.func @_attn_prop_kernel(%arg0: i32, %arg1: memref<2x8x32xf32, #tpu.memory_space<vmem>>, %arg2: memref<2x8x32xf32, #tpu.memory_space<vmem>>, %arg3: memref<4x32x8xf32, #tpu.memory_space<vmem>>, %arg4: memref<4x1x8xf32, #tpu.memory_space<vmem>>, %arg5: memref<4x32x8xf32, #tpu.memory_space<vmem>>, %arg6: memref<4x1x8xf32, #tpu.memory_space<vmem>>, %arg7: memref<4x32x8xf32, #tpu.memory_space<vmem>>, %arg8: memref<4x1x8xf32, #tpu.memory_space<vmem>>, %arg9: memref<4x8x32xf32, #tpu.memory_space<vmem>>, %arg10: memref<1x32xf32, #tpu.memory_space<vmem>>, %arg11: memref<32x64xf32, #tpu.memory_space<vmem>>, %arg12: memref<32x64xf32, #tpu.memory_space<vmem>>, %arg13: memref<1x64xf32, #tpu.memory_space<vmem>>, %arg14: memref<64x32xf32, #tpu.memory_space<vmem>>, %arg15: memref<1x32xf32, #tpu.memory_space<vmem>>, %arg16: memref<2x8x32xf32, #tpu.memory_space<vmem>>) attributes {dimension_semantics = [#tpu.dimension_semantics<parallel>], iteration_bounds = array<i64: 2>, scalar_prefetch = 0 : i64, scratch_operands = 0 : i64, tpu.core_type = #tpu.core_type<tc>, window_params = [{transform_indices = @transform_0, window_bounds = array<i64: 2, 8, 32>}, {transform_indices = @transform_1, window_bounds = array<i64: 2, 8, 32>}, {pipeline_mode = #tpu.pipeline_mode<synchronous>, transform_indices = @transform_2, window_bounds = array<i64: 4, 32, 8>}, {pipeline_mode = #tpu.pipeline_mode<synchronous>, transform_indices = @transform_3, window_bounds = array<i64: 4, 1, 8>}, {pipeline_mode = #tpu.pipeline_mode<synchronous>, transform_indices = @transform_4, window_bounds = array<i64: 4, 32, 8>}, {pipeline_mode = #tpu.pipeline_mode<synchronous>, transform_indices = @transform_5, window_bounds = array<i64: 4, 1, 8>}, {pipeline_mode = #tpu.pipeline_mode<synchronous>, transform_indices = @transform_6, window_bounds = array<i64: 4, 32, 8>}, {pipeline_mode = #tpu.pipeline_mode<synchronous>, transform_indices = @transform_7, window_bounds = array<i64: 4, 1, 8>}, {pipeline_mode = #tpu.pipeline_mode<synchronous>, transform_indices = @transform_8, window_bounds = array<i64: 4, 8, 32>}, {pipeline_mode = #tpu.pipeline_mode<synchronous>, transform_indices = @transform_9, window_bounds = array<i64: 1, 32>}, {pipeline_mode = #tpu.pipeline_mode<synchronous>, transform_indices = @transform_10, window_bounds = array<i64: 32, 64>}, {pipeline_mode = #tpu.pipeline_mode<synchronous>, transform_indices = @transform_11, window_bounds = array<i64: 32, 64>}, {pipeline_mode = #tpu.pipeline_mode<synchronous>, transform_indices = @transform_12, window_bounds = array<i64: 1, 64>}, {pipeline_mode = #tpu.pipeline_mode<synchronous>, transform_indices = @transform_13, window_bounds = array<i64: 64, 32>}, {pipeline_mode = #tpu.pipeline_mode<synchronous>, transform_indices = @transform_14, window_bounds = array<i64: 1, 32>}, {transform_indices = @transform_15, window_bounds = array<i64: 2, 8, 32>}]} {
    %c0 = arith.constant 0 : index
    %c0_0 = arith.constant 0 : index
    %c0_1 = arith.constant 0 : index
    %0 = vector.load %arg1[%c0, %c0_0, %c0_1] : memref<2x8x32xf32, #tpu.memory_space<vmem>>, vector<2x8x32xf32>
    %1 = vector.shape_cast %0 : vector<2x8x32xf32> to vector<16x32xf32>
    %c0_2 = arith.constant 0 : index
    %c0_3 = arith.constant 0 : index
    %c0_4 = arith.constant 0 : index
    %2 = vector.load %arg2[%c0_2, %c0_3, %c0_4] : memref<2x8x32xf32, #tpu.memory_space<vmem>>, vector<2x8x32xf32>
    %3 = vector.shape_cast %2 : vector<2x8x32xf32> to vector<16x32xf32>
    %cst = arith.constant 0.000000e+00 : f32
    %4 = vector.broadcast %cst : f32 to vector<16x32xf32>
    %c0_5 = arith.constant 0 : index
    %c0_6 = arith.constant 0 : index
    %c0_7 = arith.constant 0 : index
    %5 = vector.load %arg3[%c0_5, %c0_6, %c0_7] : memref<4x32x8xf32, #tpu.memory_space<vmem>>, vector<1x32x8xf32>
    %6 = vector.shape_cast %5 : vector<1x32x8xf32> to vector<32x8xf32>
    %cst_8 = arith.constant dense<0.000000e+00> : vector<16x8xf32>
    %7 = tpu.matmul %1, %6, %cst_8 {dimension_numbers = #tpu.dot_dimension_numbers<[1], [0], [0], [1], [0, 0, 1, 1], [], []>} : vector<16x32xf32>, vector<32x8xf32>, vector<16x8xf32> -> vector<16x8xf32>
    %c0_9 = arith.constant 0 : index
    %c0_10 = arith.constant 0 : index
    %c0_11 = arith.constant 0 : index
    %8 = vector.load %arg4[%c0_9, %c0_10, %c0_11] : memref<4x1x8xf32, #tpu.memory_space<vmem>>, vector<1x1x8xf32>
    %9 = vector.shape_cast %8 : vector<1x1x8xf32> to vector<1x8xf32>
    %10 = vector.broadcast %9 : vector<1x8xf32> to vector<16x8xf32>
    %11 = arith.addf %7, %10 : vector<16x8xf32>
    %c0_12 = arith.constant 0 : index
    %c0_13 = arith.constant 0 : index
    %c0_14 = arith.constant 0 : index
    %12 = vector.load %arg5[%c0_12, %c0_13, %c0_14] : memref<4x32x8xf32, #tpu.memory_space<vmem>>, vector<1x32x8xf32>
    %13 = vector.shape_cast %12 : vector<1x32x8xf32> to vector<32x8xf32>
    %cst_15 = arith.constant dense<0.000000e+00> : vector<16x8xf32>
    %14 = tpu.matmul %3, %13, %cst_15 {dimension_numbers = #tpu.dot_dimension_numbers<[1], [0], [0], [1], [0, 0, 1, 1], [], []>} : vector<16x32xf32>, vector<32x8xf32>, vector<16x8xf32> -> vector<16x8xf32>
    %c0_16 = arith.constant 0 : index
    %c0_17 = arith.constant 0 : index
    %c0_18 = arith.constant 0 : index
    %15 = vector.load %arg6[%c0_16, %c0_17, %c0_18] : memref<4x1x8xf32, #tpu.memory_space<vmem>>, vector<1x1x8xf32>
    %16 = vector.shape_cast %15 : vector<1x1x8xf32> to vector<1x8xf32>
    %17 = vector.broadcast %16 : vector<1x8xf32> to vector<16x8xf32>
    %18 = arith.addf %14, %17 : vector<16x8xf32>
    %c0_19 = arith.constant 0 : index
    %c0_20 = arith.constant 0 : index
    %c0_21 = arith.constant 0 : index
    %19 = vector.load %arg7[%c0_19, %c0_20, %c0_21] : memref<4x32x8xf32, #tpu.memory_space<vmem>>, vector<1x32x8xf32>
    %20 = vector.shape_cast %19 : vector<1x32x8xf32> to vector<32x8xf32>
    %cst_22 = arith.constant dense<0.000000e+00> : vector<16x8xf32>
    %21 = tpu.matmul %3, %20, %cst_22 {dimension_numbers = #tpu.dot_dimension_numbers<[1], [0], [0], [1], [0, 0, 1, 1], [], []>} : vector<16x32xf32>, vector<32x8xf32>, vector<16x8xf32> -> vector<16x8xf32>
    %c0_23 = arith.constant 0 : index
    %c0_24 = arith.constant 0 : index
    %c0_25 = arith.constant 0 : index
    %22 = vector.load %arg8[%c0_23, %c0_24, %c0_25] : memref<4x1x8xf32, #tpu.memory_space<vmem>>, vector<1x1x8xf32>
    %23 = vector.shape_cast %22 : vector<1x1x8xf32> to vector<1x8xf32>
    %24 = vector.broadcast %23 : vector<1x8xf32> to vector<16x8xf32>
    %25 = arith.addf %21, %24 : vector<16x8xf32>
    %26 = vector.shape_cast %11 : vector<16x8xf32> to vector<2x8x8xf32>
    %27 = vector.shape_cast %18 : vector<16x8xf32> to vector<2x8x8xf32>
    %28 = vector.shape_cast %25 : vector<16x8xf32> to vector<2x8x8xf32>
    "tpu.trace_start"() <{level = 10 : i32, message = "bnd,bmd->bnm"}> : () -> ()
    %cst_26 = arith.constant dense<0.000000e+00> : vector<2x8x8xf32>
    %29 = tpu.matmul %26, %27, %cst_26 {dimension_numbers = #tpu.dot_dimension_numbers<[2], [2], [1], [1], [0, 0, 0, 1, 1, 1], [0], [0]>} : vector<2x8x8xf32>, vector<2x8x8xf32>, vector<2x8x8xf32> -> vector<2x8x8xf32>
    "tpu.trace_stop"() : () -> ()
    %cst_27 = arith.constant dense<0xFF800000> : vector<2x8xf32>
    %30 = vector.multi_reduction <maximumf>, %29, %cst_27 [2] : vector<2x8x8xf32> to vector<2x8xf32>
    %31 = vector.shape_cast %30 : vector<2x8xf32> to vector<2x8x1xf32>
    %32 = vector.broadcast %31 : vector<2x8x1xf32> to vector<2x8x8xf32>
    %33 = arith.subf %29, %32 : vector<2x8x8xf32>
    %34 = math.exp %33 : vector<2x8x8xf32>
    %cst_28 = arith.constant dense<0.000000e+00> : vector<2x8xf32>
    %35 = vector.multi_reduction <add>, %34, %cst_28 [2] : vector<2x8x8xf32> to vector<2x8xf32>
    %36 = vector.shape_cast %35 : vector<2x8xf32> to vector<2x8x1xf32>
    %37 = tpu.reciprocal %36 {approx = true} : vector<2x8x1xf32> -> vector<2x8x1xf32>
    %38 = vector.broadcast %37 : vector<2x8x1xf32> to vector<2x8x8xf32>
    %39 = arith.mulf %34, %38 : vector<2x8x8xf32>
    "tpu.trace_start"() <{level = 10 : i32, message = "bnm,bmd->bnd"}> : () -> ()
    %cst_29 = arith.constant dense<0.000000e+00> : vector<2x8x8xf32>
    %40 = tpu.matmul %39, %28, %cst_29 {dimension_numbers = #tpu.dot_dimension_numbers<[2], [1], [1], [2], [0, 0, 0, 1, 1, 2], [0], [0]>} : vector<2x8x8xf32>, vector<2x8x8xf32>, vector<2x8x8xf32> -> vector<2x8x8xf32>
    "tpu.trace_stop"() : () -> ()
    %41 = vector.shape_cast %40 : vector<2x8x8xf32> to vector<16x8xf32>
    %c0_30 = arith.constant 0 : index
    %c0_31 = arith.constant 0 : index
    %c0_32 = arith.constant 0 : index
    %42 = vector.load %arg9[%c0_30, %c0_31, %c0_32] : memref<4x8x32xf32, #tpu.memory_space<vmem>>, vector<1x8x32xf32>
    %43 = vector.shape_cast %42 : vector<1x8x32xf32> to vector<8x32xf32>
    %cst_33 = arith.constant dense<0.000000e+00> : vector<16x32xf32>
    %44 = tpu.matmul %41, %43, %cst_33 {dimension_numbers = #tpu.dot_dimension_numbers<[1], [0], [0], [1], [0, 0, 1, 1], [], []>} : vector<16x8xf32>, vector<8x32xf32>, vector<16x32xf32> -> vector<16x32xf32>
    %45 = arith.addf %4, %44 : vector<16x32xf32>
    %c1 = arith.constant 1 : index
    %c0_34 = arith.constant 0 : index
    %c0_35 = arith.constant 0 : index
    %46 = vector.load %arg3[%c1, %c0_34, %c0_35] : memref<4x32x8xf32, #tpu.memory_space<vmem>>, vector<1x32x8xf32>
    %47 = vector.shape_cast %46 : vector<1x32x8xf32> to vector<32x8xf32>
    %cst_36 = arith.constant dense<0.000000e+00> : vector<16x8xf32>
    %48 = tpu.matmul %1, %47, %cst_36 {dimension_numbers = #tpu.dot_dimension_numbers<[1], [0], [0], [1], [0, 0, 1, 1], [], []>} : vector<16x32xf32>, vector<32x8xf32>, vector<16x8xf32> -> vector<16x8xf32>
    %c1_37 = arith.constant 1 : index
    %c0_38 = arith.constant 0 : index
    %c0_39 = arith.constant 0 : index
    %49 = vector.load %arg4[%c1_37, %c0_38, %c0_39] : memref<4x1x8xf32, #tpu.memory_space<vmem>>, vector<1x1x8xf32>
    %50 = vector.shape_cast %49 : vector<1x1x8xf32> to vector<1x8xf32>
    %51 = vector.broadcast %50 : vector<1x8xf32> to vector<16x8xf32>
    %52 = arith.addf %48, %51 : vector<16x8xf32>
    %c1_40 = arith.constant 1 : index
    %c0_41 = arith.constant 0 : index
    %c0_42 = arith.constant 0 : index
    %53 = vector.load %arg5[%c1_40, %c0_41, %c0_42] : memref<4x32x8xf32, #tpu.memory_space<vmem>>, vector<1x32x8xf32>
    %54 = vector.shape_cast %53 : vector<1x32x8xf32> to vector<32x8xf32>
    %cst_43 = arith.constant dense<0.000000e+00> : vector<16x8xf32>
    %55 = tpu.matmul %3, %54, %cst_43 {dimension_numbers = #tpu.dot_dimension_numbers<[1], [0], [0], [1], [0, 0, 1, 1], [], []>} : vector<16x32xf32>, vector<32x8xf32>, vector<16x8xf32> -> vector<16x8xf32>
    %c1_44 = arith.constant 1 : index
    %c0_45 = arith.constant 0 : index
    %c0_46 = arith.constant 0 : index
    %56 = vector.load %arg6[%c1_44, %c0_45, %c0_46] : memref<4x1x8xf32, #tpu.memory_space<vmem>>, vector<1x1x8xf32>
    %57 = vector.shape_cast %56 : vector<1x1x8xf32> to vector<1x8xf32>
    %58 = vector.broadcast %57 : vector<1x8xf32> to vector<16x8xf32>
    %59 = arith.addf %55, %58 : vector<16x8xf32>
    %c1_47 = arith.constant 1 : index
    %c0_48 = arith.constant 0 : index
    %c0_49 = arith.constant 0 : index
    %60 = vector.load %arg7[%c1_47, %c0_48, %c0_49] : memref<4x32x8xf32, #tpu.memory_space<vmem>>, vector<1x32x8xf32>
    %61 = vector.shape_cast %60 : vector<1x32x8xf32> to vector<32x8xf32>
    %cst_50 = arith.constant dense<0.000000e+00> : vector<16x8xf32>
    %62 = tpu.matmul %3, %61, %cst_50 {dimension_numbers = #tpu.dot_dimension_numbers<[1], [0], [0], [1], [0, 0, 1, 1], [], []>} : vector<16x32xf32>, vector<32x8xf32>, vector<16x8xf32> -> vector<16x8xf32>
    %c1_51 = arith.constant 1 : index
    %c0_52 = arith.constant 0 : index
    %c0_53 = arith.constant 0 : index
    %63 = vector.load %arg8[%c1_51, %c0_52, %c0_53] : memref<4x1x8xf32, #tpu.memory_space<vmem>>, vector<1x1x8xf32>
    %64 = vector.shape_cast %63 : vector<1x1x8xf32> to vector<1x8xf32>
    %65 = vector.broadcast %64 : vector<1x8xf32> to vector<16x8xf32>
    %66 = arith.addf %62, %65 : vector<16x8xf32>
    %67 = vector.shape_cast %52 : vector<16x8xf32> to vector<2x8x8xf32>
    %68 = vector.shape_cast %59 : vector<16x8xf32> to vector<2x8x8xf32>
    %69 = vector.shape_cast %66 : vector<16x8xf32> to vector<2x8x8xf32>
    "tpu.trace_start"() <{level = 10 : i32, message = "bnd,bmd->bnm"}> : () -> ()
    %cst_54 = arith.constant dense<0.000000e+00> : vector<2x8x8xf32>
    %70 = tpu.matmul %67, %68, %cst_54 {dimension_numbers = #tpu.dot_dimension_numbers<[2], [2], [1], [1], [0, 0, 0, 1, 1, 1], [0], [0]>} : vector<2x8x8xf32>, vector<2x8x8xf32>, vector<2x8x8xf32> -> vector<2x8x8xf32>
    "tpu.trace_stop"() : () -> ()
    %cst_55 = arith.constant dense<0xFF800000> : vector<2x8xf32>
    %71 = vector.multi_reduction <maximumf>, %70, %cst_55 [2] : vector<2x8x8xf32> to vector<2x8xf32>
    %72 = vector.shape_cast %71 : vector<2x8xf32> to vector<2x8x1xf32>
    %73 = vector.broadcast %72 : vector<2x8x1xf32> to vector<2x8x8xf32>
    %74 = arith.subf %70, %73 : vector<2x8x8xf32>
    %75 = math.exp %74 : vector<2x8x8xf32>
    %cst_56 = arith.constant dense<0.000000e+00> : vector<2x8xf32>
    %76 = vector.multi_reduction <add>, %75, %cst_56 [2] : vector<2x8x8xf32> to vector<2x8xf32>
    %77 = vector.shape_cast %76 : vector<2x8xf32> to vector<2x8x1xf32>
    %78 = tpu.reciprocal %77 {approx = true} : vector<2x8x1xf32> -> vector<2x8x1xf32>
    %79 = vector.broadcast %78 : vector<2x8x1xf32> to vector<2x8x8xf32>
    %80 = arith.mulf %75, %79 : vector<2x8x8xf32>
    "tpu.trace_start"() <{level = 10 : i32, message = "bnm,bmd->bnd"}> : () -> ()
    %cst_57 = arith.constant dense<0.000000e+00> : vector<2x8x8xf32>
    %81 = tpu.matmul %80, %69, %cst_57 {dimension_numbers = #tpu.dot_dimension_numbers<[2], [1], [1], [2], [0, 0, 0, 1, 1, 2], [0], [0]>} : vector<2x8x8xf32>, vector<2x8x8xf32>, vector<2x8x8xf32> -> vector<2x8x8xf32>
    "tpu.trace_stop"() : () -> ()
    %82 = vector.shape_cast %81 : vector<2x8x8xf32> to vector<16x8xf32>
    %c1_58 = arith.constant 1 : index
    %c0_59 = arith.constant 0 : index
    %c0_60 = arith.constant 0 : index
    %83 = vector.load %arg9[%c1_58, %c0_59, %c0_60] : memref<4x8x32xf32, #tpu.memory_space<vmem>>, vector<1x8x32xf32>
    %84 = vector.shape_cast %83 : vector<1x8x32xf32> to vector<8x32xf32>
    %cst_61 = arith.constant dense<0.000000e+00> : vector<16x32xf32>
    %85 = tpu.matmul %82, %84, %cst_61 {dimension_numbers = #tpu.dot_dimension_numbers<[1], [0], [0], [1], [0, 0, 1, 1], [], []>} : vector<16x8xf32>, vector<8x32xf32>, vector<16x32xf32> -> vector<16x32xf32>
    %86 = arith.addf %45, %85 : vector<16x32xf32>
    %c2 = arith.constant 2 : index
    %c0_62 = arith.constant 0 : index
    %c0_63 = arith.constant 0 : index
    %87 = vector.load %arg3[%c2, %c0_62, %c0_63] : memref<4x32x8xf32, #tpu.memory_space<vmem>>, vector<1x32x8xf32>
    %88 = vector.shape_cast %87 : vector<1x32x8xf32> to vector<32x8xf32>
    %cst_64 = arith.constant dense<0.000000e+00> : vector<16x8xf32>
    %89 = tpu.matmul %1, %88, %cst_64 {dimension_numbers = #tpu.dot_dimension_numbers<[1], [0], [0], [1], [0, 0, 1, 1], [], []>} : vector<16x32xf32>, vector<32x8xf32>, vector<16x8xf32> -> vector<16x8xf32>
    %c2_65 = arith.constant 2 : index
    %c0_66 = arith.constant 0 : index
    %c0_67 = arith.constant 0 : index
    %90 = vector.load %arg4[%c2_65, %c0_66, %c0_67] : memref<4x1x8xf32, #tpu.memory_space<vmem>>, vector<1x1x8xf32>
    %91 = vector.shape_cast %90 : vector<1x1x8xf32> to vector<1x8xf32>
    %92 = vector.broadcast %91 : vector<1x8xf32> to vector<16x8xf32>
    %93 = arith.addf %89, %92 : vector<16x8xf32>
    %c2_68 = arith.constant 2 : index
    %c0_69 = arith.constant 0 : index
    %c0_70 = arith.constant 0 : index
    %94 = vector.load %arg5[%c2_68, %c0_69, %c0_70] : memref<4x32x8xf32, #tpu.memory_space<vmem>>, vector<1x32x8xf32>
    %95 = vector.shape_cast %94 : vector<1x32x8xf32> to vector<32x8xf32>
    %cst_71 = arith.constant dense<0.000000e+00> : vector<16x8xf32>
    %96 = tpu.matmul %3, %95, %cst_71 {dimension_numbers = #tpu.dot_dimension_numbers<[1], [0], [0], [1], [0, 0, 1, 1], [], []>} : vector<16x32xf32>, vector<32x8xf32>, vector<16x8xf32> -> vector<16x8xf32>
    %c2_72 = arith.constant 2 : index
    %c0_73 = arith.constant 0 : index
    %c0_74 = arith.constant 0 : index
    %97 = vector.load %arg6[%c2_72, %c0_73, %c0_74] : memref<4x1x8xf32, #tpu.memory_space<vmem>>, vector<1x1x8xf32>
    %98 = vector.shape_cast %97 : vector<1x1x8xf32> to vector<1x8xf32>
    %99 = vector.broadcast %98 : vector<1x8xf32> to vector<16x8xf32>
    %100 = arith.addf %96, %99 : vector<16x8xf32>
    %c2_75 = arith.constant 2 : index
    %c0_76 = arith.constant 0 : index
    %c0_77 = arith.constant 0 : index
    %101 = vector.load %arg7[%c2_75, %c0_76, %c0_77] : memref<4x32x8xf32, #tpu.memory_space<vmem>>, vector<1x32x8xf32>
    %102 = vector.shape_cast %101 : vector<1x32x8xf32> to vector<32x8xf32>
    %cst_78 = arith.constant dense<0.000000e+00> : vector<16x8xf32>
    %103 = tpu.matmul %3, %102, %cst_78 {dimension_numbers = #tpu.dot_dimension_numbers<[1], [0], [0], [1], [0, 0, 1, 1], [], []>} : vector<16x32xf32>, vector<32x8xf32>, vector<16x8xf32> -> vector<16x8xf32>
    %c2_79 = arith.constant 2 : index
    %c0_80 = arith.constant 0 : index
    %c0_81 = arith.constant 0 : index
    %104 = vector.load %arg8[%c2_79, %c0_80, %c0_81] : memref<4x1x8xf32, #tpu.memory_space<vmem>>, vector<1x1x8xf32>
    %105 = vector.shape_cast %104 : vector<1x1x8xf32> to vector<1x8xf32>
    %106 = vector.broadcast %105 : vector<1x8xf32> to vector<16x8xf32>
    %107 = arith.addf %103, %106 : vector<16x8xf32>
    %108 = vector.shape_cast %93 : vector<16x8xf32> to vector<2x8x8xf32>
    %109 = vector.shape_cast %100 : vector<16x8xf32> to vector<2x8x8xf32>
    %110 = vector.shape_cast %107 : vector<16x8xf32> to vector<2x8x8xf32>
    "tpu.trace_start"() <{level = 10 : i32, message = "bnd,bmd->bnm"}> : () -> ()
    %cst_82 = arith.constant dense<0.000000e+00> : vector<2x8x8xf32>
    %111 = tpu.matmul %108, %109, %cst_82 {dimension_numbers = #tpu.dot_dimension_numbers<[2], [2], [1], [1], [0, 0, 0, 1, 1, 1], [0], [0]>} : vector<2x8x8xf32>, vector<2x8x8xf32>, vector<2x8x8xf32> -> vector<2x8x8xf32>
    "tpu.trace_stop"() : () -> ()
    %cst_83 = arith.constant dense<0xFF800000> : vector<2x8xf32>
    %112 = vector.multi_reduction <maximumf>, %111, %cst_83 [2] : vector<2x8x8xf32> to vector<2x8xf32>
    %113 = vector.shape_cast %112 : vector<2x8xf32> to vector<2x8x1xf32>
    %114 = vector.broadcast %113 : vector<2x8x1xf32> to vector<2x8x8xf32>
    %115 = arith.subf %111, %114 : vector<2x8x8xf32>
    %116 = math.exp %115 : vector<2x8x8xf32>
    %cst_84 = arith.constant dense<0.000000e+00> : vector<2x8xf32>
    %117 = vector.multi_reduction <add>, %116, %cst_84 [2] : vector<2x8x8xf32> to vector<2x8xf32>
    %118 = vector.shape_cast %117 : vector<2x8xf32> to vector<2x8x1xf32>
    %119 = tpu.reciprocal %118 {approx = true} : vector<2x8x1xf32> -> vector<2x8x1xf32>
    %120 = vector.broadcast %119 : vector<2x8x1xf32> to vector<2x8x8xf32>
    %121 = arith.mulf %116, %120 : vector<2x8x8xf32>
    "tpu.trace_start"() <{level = 10 : i32, message = "bnm,bmd->bnd"}> : () -> ()
    %cst_85 = arith.constant dense<0.000000e+00> : vector<2x8x8xf32>
    %122 = tpu.matmul %121, %110, %cst_85 {dimension_numbers = #tpu.dot_dimension_numbers<[2], [1], [1], [2], [0, 0, 0, 1, 1, 2], [0], [0]>} : vector<2x8x8xf32>, vector<2x8x8xf32>, vector<2x8x8xf32> -> vector<2x8x8xf32>
    "tpu.trace_stop"() : () -> ()
    %123 = vector.shape_cast %122 : vector<2x8x8xf32> to vector<16x8xf32>
    %c2_86 = arith.constant 2 : index
    %c0_87 = arith.constant 0 : index
    %c0_88 = arith.constant 0 : index
    %124 = vector.load %arg9[%c2_86, %c0_87, %c0_88] : memref<4x8x32xf32, #tpu.memory_space<vmem>>, vector<1x8x32xf32>
    %125 = vector.shape_cast %124 : vector<1x8x32xf32> to vector<8x32xf32>
    %cst_89 = arith.constant dense<0.000000e+00> : vector<16x32xf32>
    %126 = tpu.matmul %123, %125, %cst_89 {dimension_numbers = #tpu.dot_dimension_numbers<[1], [0], [0], [1], [0, 0, 1, 1], [], []>} : vector<16x8xf32>, vector<8x32xf32>, vector<16x32xf32> -> vector<16x32xf32>
    %127 = arith.addf %86, %126 : vector<16x32xf32>
    %c3 = arith.constant 3 : index
    %c0_90 = arith.constant 0 : index
    %c0_91 = arith.constant 0 : index
    %128 = vector.load %arg3[%c3, %c0_90, %c0_91] : memref<4x32x8xf32, #tpu.memory_space<vmem>>, vector<1x32x8xf32>
    %129 = vector.shape_cast %128 : vector<1x32x8xf32> to vector<32x8xf32>
    %cst_92 = arith.constant dense<0.000000e+00> : vector<16x8xf32>
    %130 = tpu.matmul %1, %129, %cst_92 {dimension_numbers = #tpu.dot_dimension_numbers<[1], [0], [0], [1], [0, 0, 1, 1], [], []>} : vector<16x32xf32>, vector<32x8xf32>, vector<16x8xf32> -> vector<16x8xf32>
    %c3_93 = arith.constant 3 : index
    %c0_94 = arith.constant 0 : index
    %c0_95 = arith.constant 0 : index
    %131 = vector.load %arg4[%c3_93, %c0_94, %c0_95] : memref<4x1x8xf32, #tpu.memory_space<vmem>>, vector<1x1x8xf32>
    %132 = vector.shape_cast %131 : vector<1x1x8xf32> to vector<1x8xf32>
    %133 = vector.broadcast %132 : vector<1x8xf32> to vector<16x8xf32>
    %134 = arith.addf %130, %133 : vector<16x8xf32>
    %c3_96 = arith.constant 3 : index
    %c0_97 = arith.constant 0 : index
    %c0_98 = arith.constant 0 : index
    %135 = vector.load %arg5[%c3_96, %c0_97, %c0_98] : memref<4x32x8xf32, #tpu.memory_space<vmem>>, vector<1x32x8xf32>
    %136 = vector.shape_cast %135 : vector<1x32x8xf32> to vector<32x8xf32>
    %cst_99 = arith.constant dense<0.000000e+00> : vector<16x8xf32>
    %137 = tpu.matmul %3, %136, %cst_99 {dimension_numbers = #tpu.dot_dimension_numbers<[1], [0], [0], [1], [0, 0, 1, 1], [], []>} : vector<16x32xf32>, vector<32x8xf32>, vector<16x8xf32> -> vector<16x8xf32>
    %c3_100 = arith.constant 3 : index
    %c0_101 = arith.constant 0 : index
    %c0_102 = arith.constant 0 : index
    %138 = vector.load %arg6[%c3_100, %c0_101, %c0_102] : memref<4x1x8xf32, #tpu.memory_space<vmem>>, vector<1x1x8xf32>
    %139 = vector.shape_cast %138 : vector<1x1x8xf32> to vector<1x8xf32>
    %140 = vector.broadcast %139 : vector<1x8xf32> to vector<16x8xf32>
    %141 = arith.addf %137, %140 : vector<16x8xf32>
    %c3_103 = arith.constant 3 : index
    %c0_104 = arith.constant 0 : index
    %c0_105 = arith.constant 0 : index
    %142 = vector.load %arg7[%c3_103, %c0_104, %c0_105] : memref<4x32x8xf32, #tpu.memory_space<vmem>>, vector<1x32x8xf32>
    %143 = vector.shape_cast %142 : vector<1x32x8xf32> to vector<32x8xf32>
    %cst_106 = arith.constant dense<0.000000e+00> : vector<16x8xf32>
    %144 = tpu.matmul %3, %143, %cst_106 {dimension_numbers = #tpu.dot_dimension_numbers<[1], [0], [0], [1], [0, 0, 1, 1], [], []>} : vector<16x32xf32>, vector<32x8xf32>, vector<16x8xf32> -> vector<16x8xf32>
    %c3_107 = arith.constant 3 : index
    %c0_108 = arith.constant 0 : index
    %c0_109 = arith.constant 0 : index
    %145 = vector.load %arg8[%c3_107, %c0_108, %c0_109] : memref<4x1x8xf32, #tpu.memory_space<vmem>>, vector<1x1x8xf32>
    %146 = vector.shape_cast %145 : vector<1x1x8xf32> to vector<1x8xf32>
    %147 = vector.broadcast %146 : vector<1x8xf32> to vector<16x8xf32>
    %148 = arith.addf %144, %147 : vector<16x8xf32>
    %149 = vector.shape_cast %134 : vector<16x8xf32> to vector<2x8x8xf32>
    %150 = vector.shape_cast %141 : vector<16x8xf32> to vector<2x8x8xf32>
    %151 = vector.shape_cast %148 : vector<16x8xf32> to vector<2x8x8xf32>
    "tpu.trace_start"() <{level = 10 : i32, message = "bnd,bmd->bnm"}> : () -> ()
    %cst_110 = arith.constant dense<0.000000e+00> : vector<2x8x8xf32>
    %152 = tpu.matmul %149, %150, %cst_110 {dimension_numbers = #tpu.dot_dimension_numbers<[2], [2], [1], [1], [0, 0, 0, 1, 1, 1], [0], [0]>} : vector<2x8x8xf32>, vector<2x8x8xf32>, vector<2x8x8xf32> -> vector<2x8x8xf32>
    "tpu.trace_stop"() : () -> ()
    %cst_111 = arith.constant dense<0xFF800000> : vector<2x8xf32>
    %153 = vector.multi_reduction <maximumf>, %152, %cst_111 [2] : vector<2x8x8xf32> to vector<2x8xf32>
    %154 = vector.shape_cast %153 : vector<2x8xf32> to vector<2x8x1xf32>
    %155 = vector.broadcast %154 : vector<2x8x1xf32> to vector<2x8x8xf32>
    %156 = arith.subf %152, %155 : vector<2x8x8xf32>
    %157 = math.exp %156 : vector<2x8x8xf32>
    %cst_112 = arith.constant dense<0.000000e+00> : vector<2x8xf32>
    %158 = vector.multi_reduction <add>, %157, %cst_112 [2] : vector<2x8x8xf32> to vector<2x8xf32>
    %159 = vector.shape_cast %158 : vector<2x8xf32> to vector<2x8x1xf32>
    %160 = tpu.reciprocal %159 {approx = true} : vector<2x8x1xf32> -> vector<2x8x1xf32>
    %161 = vector.broadcast %160 : vector<2x8x1xf32> to vector<2x8x8xf32>
    %162 = arith.mulf %157, %161 : vector<2x8x8xf32>
    "tpu.trace_start"() <{level = 10 : i32, message = "bnm,bmd->bnd"}> : () -> ()
    %cst_113 = arith.constant dense<0.000000e+00> : vector<2x8x8xf32>
    %163 = tpu.matmul %162, %151, %cst_113 {dimension_numbers = #tpu.dot_dimension_numbers<[2], [1], [1], [2], [0, 0, 0, 1, 1, 2], [0], [0]>} : vector<2x8x8xf32>, vector<2x8x8xf32>, vector<2x8x8xf32> -> vector<2x8x8xf32>
    "tpu.trace_stop"() : () -> ()
    %164 = vector.shape_cast %163 : vector<2x8x8xf32> to vector<16x8xf32>
    %c3_114 = arith.constant 3 : index
    %c0_115 = arith.constant 0 : index
    %c0_116 = arith.constant 0 : index
    %165 = vector.load %arg9[%c3_114, %c0_115, %c0_116] : memref<4x8x32xf32, #tpu.memory_space<vmem>>, vector<1x8x32xf32>
    %166 = vector.shape_cast %165 : vector<1x8x32xf32> to vector<8x32xf32>
    %cst_117 = arith.constant dense<0.000000e+00> : vector<16x32xf32>
    %167 = tpu.matmul %164, %166, %cst_117 {dimension_numbers = #tpu.dot_dimension_numbers<[1], [0], [0], [1], [0, 0, 1, 1], [], []>} : vector<16x8xf32>, vector<8x32xf32>, vector<16x32xf32> -> vector<16x32xf32>
    %168 = arith.addf %127, %167 : vector<16x32xf32>
    %c0_118 = arith.constant 0 : index
    %c0_119 = arith.constant 0 : index
    %169 = vector.load %arg10[%c0_118, %c0_119] : memref<1x32xf32, #tpu.memory_space<vmem>>, vector<1x32xf32>
    %170 = vector.broadcast %169 : vector<1x32xf32> to vector<16x32xf32>
    %171 = arith.addf %168, %170 : vector<16x32xf32>
    %c0_120 = arith.constant 0 : index
    %c0_121 = arith.constant 0 : index
    %172 = vector.load %arg11[%c0_120, %c0_121] : memref<32x64xf32, #tpu.memory_space<vmem>>, vector<32x64xf32>
    %cst_122 = arith.constant dense<0.000000e+00> : vector<16x64xf32>
    %173 = tpu.matmul %1, %172, %cst_122 {dimension_numbers = #tpu.dot_dimension_numbers<[1], [0], [0], [1], [0, 0, 1, 1], [], []>} : vector<16x32xf32>, vector<32x64xf32>, vector<16x64xf32> -> vector<16x64xf32>
    %c0_123 = arith.constant 0 : index
    %c0_124 = arith.constant 0 : index
    %174 = vector.load %arg12[%c0_123, %c0_124] : memref<32x64xf32, #tpu.memory_space<vmem>>, vector<32x64xf32>
    %cst_125 = arith.constant dense<0.000000e+00> : vector<16x64xf32>
    %175 = tpu.matmul %171, %174, %cst_125 {dimension_numbers = #tpu.dot_dimension_numbers<[1], [0], [0], [1], [0, 0, 1, 1], [], []>} : vector<16x32xf32>, vector<32x64xf32>, vector<16x64xf32> -> vector<16x64xf32>
    %176 = arith.addf %173, %175 : vector<16x64xf32>
    %c0_126 = arith.constant 0 : index
    %c0_127 = arith.constant 0 : index
    %177 = vector.load %arg13[%c0_126, %c0_127] : memref<1x64xf32, #tpu.memory_space<vmem>>, vector<1x64xf32>
    %178 = vector.broadcast %177 : vector<1x64xf32> to vector<16x64xf32>
    %179 = arith.addf %176, %178 : vector<16x64xf32>
    %cst_128 = arith.constant 0.000000e+00 : f32
    %180 = vector.broadcast %cst_128 : f32 to vector<16x64xf32>
    %181 = arith.maximumf %179, %180 : vector<16x64xf32>
    %c0_129 = arith.constant 0 : index
    %c0_130 = arith.constant 0 : index
    %182 = vector.load %arg14[%c0_129, %c0_130] : memref<64x32xf32, #tpu.memory_space<vmem>>, vector<64x32xf32>
    %cst_131 = arith.constant dense<0.000000e+00> : vector<16x32xf32>
    %183 = tpu.matmul %181, %182, %cst_131 {dimension_numbers = #tpu.dot_dimension_numbers<[1], [0], [0], [1], [0, 0, 1, 1], [], []>} : vector<16x64xf32>, vector<64x32xf32>, vector<16x32xf32> -> vector<16x32xf32>
    %c0_132 = arith.constant 0 : index
    %c0_133 = arith.constant 0 : index
    %184 = vector.load %arg15[%c0_132, %c0_133] : memref<1x32xf32, #tpu.memory_space<vmem>>, vector<1x32xf32>
    %185 = vector.broadcast %184 : vector<1x32xf32> to vector<16x32xf32>
    %186 = arith.addf %183, %185 : vector<16x32xf32>
    %187 = arith.addf %1, %186 : vector<16x32xf32>
    %188 = vector.shape_cast %187 : vector<16x32xf32> to vector<2x8x32xf32>
    %c0_134 = arith.constant 0 : index
    %c0_135 = arith.constant 0 : index
    %c0_136 = arith.constant 0 : index
    %189 = vector.load %arg16[%c0_134, %c0_135, %c0_136] : memref<2x8x32xf32, #tpu.memory_space<vmem>>, vector<2x8x32xf32>
    tpu.vector_store %arg16[%c0_134, %c0_135, %c0_136], %188 {strides = array<i32>} : memref<2x8x32xf32, #tpu.memory_space<vmem>>, vector<2x8x32xf32>,
    return
  }
  func.func @transform_0(%arg0: i32) -> (i32, i32, i32) {
    %c0_i32 = arith.constant 0 : i32
    %c0_i32_0 = arith.constant 0 : i32
    %c0_i32_1 = arith.constant 0 : i32
    return %arg0, %c0_i32, %c0_i32_0 : i32, i32, i32
  }
  func.func @transform_1(%arg0: i32) -> (i32, i32, i32) {
    %c0_i32 = arith.constant 0 : i32
    %c0_i32_0 = arith.constant 0 : i32
    %c0_i32_1 = arith.constant 0 : i32
    return %arg0, %c0_i32, %c0_i32_0 : i32, i32, i32
  }
  func.func @transform_2(%arg0: i32) -> (i32, i32, i32) {
    %c0_i32 = arith.constant 0 : i32
    %c0_i32_0 = arith.constant 0 : i32
    %c0_i32_1 = arith.constant 0 : i32
    %c0_i32_2 = arith.constant 0 : i32
    return %c0_i32, %c0_i32_0, %c0_i32_1 : i32, i32, i32
  }
  func.func @transform_3(%arg0: i32) -> (i32, i32, i32) {
    %c0_i32 = arith.constant 0 : i32
    %c0_i32_0 = arith.constant 0 : i32
    %c0_i32_1 = arith.constant 0 : i32
    %c0_i32_2 = arith.constant 0 : i32
    return %c0_i32, %c0_i32_0, %c0_i32_1 : i32, i32, i32
  }
  func.func @transform_4(%arg0: i32) -> (i32, i32, i32) {
    %c0_i32 = arith.constant 0 : i32
    %c0_i32_0 = arith.constant 0 : i32
    %c0_i32_1 = arith.constant 0 : i32
    %c0_i32_2 = arith.constant 0 : i32
    return %c0_i32, %c0_i32_0, %c0_i32_1 : i32, i32, i32
  }
  func.func @transform_5(%arg0: i32) -> (i32, i32, i32) {
    %c0_i32 = arith.constant 0 : i32
    %c0_i32_0 = arith.constant 0 : i32
    %c0_i32_1 = arith.constant 0 : i32
    %c0_i32_2 = arith.constant 0 : i32
    return %c0_i32, %c0_i32_0, %c0_i32_1 : i32, i32, i32
  }
  func.func @transform_6(%arg0: i32) -> (i32, i32, i32) {
    %c0_i32 = arith.constant 0 : i32
    %c0_i32_0 = arith.constant 0 : i32
    %c0_i32_1 = arith.constant 0 : i32
    %c0_i32_2 = arith.constant 0 : i32
    return %c0_i32, %c0_i32_0, %c0_i32_1 : i32, i32, i32
  }
  func.func @transform_7(%arg0: i32) -> (i32, i32, i32) {
    %c0_i32 = arith.constant 0 : i32
    %c0_i32_0 = arith.constant 0 : i32
    %c0_i32_1 = arith.constant 0 : i32
    %c0_i32_2 = arith.constant 0 : i32
    return %c0_i32, %c0_i32_0, %c0_i32_1 : i32, i32, i32
  }
  func.func @transform_8(%arg0: i32) -> (i32, i32, i32) {
    %c0_i32 = arith.constant 0 : i32
    %c0_i32_0 = arith.constant 0 : i32
    %c0_i32_1 = arith.constant 0 : i32
    %c0_i32_2 = arith.constant 0 : i32
    return %c0_i32, %c0_i32_0, %c0_i32_1 : i32, i32, i32
  }
  func.func @transform_9(%arg0: i32) -> (i32, i32) {
    %c0_i32 = arith.constant 0 : i32
    %c0_i32_0 = arith.constant 0 : i32
    %c0_i32_1 = arith.constant 0 : i32
    return %c0_i32, %c0_i32_0 : i32, i32
  }
  func.func @transform_10(%arg0: i32) -> (i32, i32) {
    %c0_i32 = arith.constant 0 : i32
    %c0_i32_0 = arith.constant 0 : i32
    %c0_i32_1 = arith.constant 0 : i32
    return %c0_i32, %c0_i32_0 : i32, i32
  }
  func.func @transform_11(%arg0: i32) -> (i32, i32) {
    %c0_i32 = arith.constant 0 : i32
    %c0_i32_0 = arith.constant 0 : i32
    %c0_i32_1 = arith.constant 0 : i32
    return %c0_i32, %c0_i32_0 : i32, i32
  }
  func.func @transform_12(%arg0: i32) -> (i32, i32) {
    %c0_i32 = arith.constant 0 : i32
    %c0_i32_0 = arith.constant 0 : i32
    %c0_i32_1 = arith.constant 0 : i32
    return %c0_i32, %c0_i32_0 : i32, i32
  }
  func.func @transform_13(%arg0: i32) -> (i32, i32) {
    %c0_i32 = arith.constant 0 : i32
    %c0_i32_0 = arith.constant 0 : i32
    %c0_i32_1 = arith.constant 0 : i32
    return %c0_i32, %c0_i32_0 : i32, i32
  }
  func.func @transform_14(%arg0: i32) -> (i32, i32) {
    %c0_i32 = arith.constant 0 : i32
    %c0_i32_0 = arith.constant 0 : i32
    %c0_i32_1 = arith.constant 0 : i32
    return %c0_i32, %c0_i32_0 : i32, i32
  }
  func.func @transform_15(%arg0: i32) -> (i32, i32, i32) {
    %c0_i32 = arith.constant 0 : i32
    %c0_i32_0 = arith.constant 0 : i32
    %c0_i32_1 = arith.constant 0 : i32
    return %arg0, %c0_i32, %c0_i32_0 : i32, i32, i32
  }
}

</mosaic_0001>

<bundles_post_ra>
// kernel: tpu_custom_call.1
= control target key start
LH: loop header
LB: loop body
LE: loop exit
PB: predicated region body
PF: predicated region fallthrough
CT: control target
= control target key end

     0   :  { %20 = vsyncpa [#allocation3], 0  ;;  %s4892_s0 = inlined_call_operand.vmem [shape: f32[4,8,32], index: 0, kind: input, shape index: {}]   ;;  %s4893_s1 = inlined_call_operand.vmem [shape: f32[4,8,32], index: 1, kind: input, shape index: {}]   ;;  %s4894_s2 = inlined_call_operand.vmem [shape: f32[4,32,8], index: 2, kind: input, shape index: {}]   ;;  %s4895_s3 = inlined_call_operand.vmem [shape: f32[4,1,8], index: 3, kind: input, shape index: {}]   ;;  %s4896_s4 = inlined_call_operand.vmem [shape: f32[4,32,8], index: 4, kind: input, shape index: {}]   ;;  %s4897_s5 = inlined_call_operand.vmem [shape: f32[4,1,8], index: 5, kind: input, shape index: {}]   ;;  %s4898_s6 = inlined_call_operand.vmem [shape: f32[4,32,8], index: 6, kind: input, shape index: {}]   ;;  %s4899_s7 = inlined_call_operand.vmem [shape: f32[4,1,8], index: 7, kind: input, shape index: {}]   ;;  %s4900_s8 = inlined_call_operand.vmem [shape: f32[4,8,32], index: 8, kind: input, shape index: {}]   ;;  %s4901_s9 = inlined_call_operand.vmem [shape: f32[1,32], index: 9, kind: input, shape index: {}]   ;;  %s4902_s10 = inlined_call_operand.vmem [shape: f32[32,64], index: 10, kind: input, shape index: {}]   ;;  %s4903_s11 = inlined_call_operand.vmem [shape: f32[32,64], index: 11, kind: input, shape index: {}]   ;;  %s4904_s12 = inlined_call_operand.vmem [shape: f32[1,64], index: 12, kind: input, shape index: {}]   ;;  %s4905_s13 = inlined_call_operand.vmem [shape: f32[64,32], index: 13, kind: input, shape index: {}]   ;;  %s4906_s14 = inlined_call_operand.vmem [shape: f32[1,32], index: 14, kind: input, shape index: {}]   ;;  %s4907_s15 = inlined_call_operand.hbm [shape: f32[4,8,32], index: 15, kind: output, shape index: {}]  }
   0x1   :  { %22 = vsyncpa [#allocation3 + $0x1], 0  ;;  %s4349_s18 = smov 0   ;;  %s4351_s19 = smov 0  }
   0x2   :  { %s4353_s20 = smov 0   ;;  %s4355_s21 = smov 0  }
   0x3 LB: > { %4914 = sst [smem:[#allocation5_spill]] %s4250_s18  ;;  %s4370_s22 = sadd.s32 4294967295, %s4262_s21   ;;  %s4262_s21 = sphi %s4355_s21, %s4925_s21   ;;  %s4258_s20 = sphi %s4353_s20, %s4927_s20   ;;  %s4254_s19 = sphi %s4351_s19, %s4929_s19   ;;  %s4250_s18 = sphi %s4349_s18, %s4928_s18  }
   0x4   : > { %4915 = sst [smem:[#allocation6_spill]] %s4258_s20  ;;  %s3574_s23 = sadd.s32 4294967294, %s4262_s21  }
   0x5   : > { %4916 = sst [smem:[#allocation7_spill]] %s4262_s21  ;;  %s4374_s24 = sadd.s32 1, %s4262_s21  }
   0x6   : > { %4917 = sst [smem:[#allocation8_spill]] %s4374_s24  ;;  %s360_s25 = sadd.s32 1, %s4258_s20 }
   0x7   : > { %s357_s26 = ssub.s32 %s4262_s21, %s4374_s24  ;;  %p370_p0 = scmp.ne.s32.totalorder %s4258_s20, %s4254_s19 }
   0x8   : > { %p358_p1 = scmp.eq.s32.totalorder %s357_s26, 0  ;;  %p371_p2 = scmp.eq.s32.totalorder %s4370_s22, 1 }
   0x9   : > { %p376_p3 = scmp.ne.s32.totalorder %s4254_s19, %s4250_s18  ;;  %p377_p4 = scmp.eq.s32.totalorder %s3574_s23, 1 }
   0xa   : > { %s4385_s27 = scalar_select %p358_p1, %s4258_s20, %s360_s25  }
   0xb   : > { %p4387_p5 = por %p371_p2, %p370_p0  ;;  %p4391_p6 = por %p377_p4, %p376_p3 }
   0xc   : > { %4918 = sst [smem:[#allocation9_spill]] %s4385_s27  ;;  %p3577_p7 = scmp.ge.s32.totalorder %s4262_s21, 1 }
   0xd   : > { %s4920_s29 = scalar_select %p4391_p6, 1, 0 }
   0xe   : > { %p452_p8 = scmp.lt.s32.totalorder %s4262_s21, 3 }
   0xf   : > { %4921 = sst [smem:[#allocation10_spill]] %s4920_s29 }
  0x10   : > { %p453_p9 = pnand %p3577_p7, %p452_p8 }
  0x11   : > { %s3579_s25 = sshll.u32 (!%p453_p9), %s4370_s22, 1  ;;  %s502_s20 = sand.u32 (!%p453_p9), 1, %s4254_s19  }
  0x12   : > { %456 = sbr.rel (%p453_p9) target bundleno = 4092 (0xffc), region = 80  ;;  %p506_p10 = scmp.lt.s32.totalorder (!%p453_p9), %s3579_s25, 3 }
  0x13   : > { %s3578_s18 = sshll.u32 (!%p453_p9), %s502_s20, 4 }
  0x14   : > { %s504_s29 = scalar_lea.vmem (!%p453_p9), [#allocation2], %s3578_s18  ;;  %s4266_s18 = smov (!%p453_p9), [#allocation2]  }
  0x15   : > { %s4206_s21 = sshll.u32 (!%p453_p9), %s4266_s18, 4  ;;  %s4207_s21 = int_to_ptr.vmem [resolvable:$false] %s4206_s21 }
  0x16   : > { %s4208_s24 = scalar_lea.vmem (!%p453_p9), %s4207_s21, 512 }
  0x17   : > { %v525_v0 = vld [vmem:[%s4894_s2 + $0x18] sm:$0xff]  ;;  %v524_v1 = vld [vmem:[%s4894_s2 + $0x10] sm:$0xff]  ;;  %v523_v2 = vld [vmem:[%s4894_s2 + $0x8] sm:$0xff]  ;;  %s4931_s25 = smov (!%p506_p10, %s3579_s25), 3  ;;  %vm533_vm0 = vcmask 261120   ;;  %v4264_v12 = vmov 0.0  }
  0x18   : > { %3852 = vmatprep.subr.mxu1 %v525_v0  ;;  %v522_v3 = vld [vmem:[%s4894_s2] sm:$0xff]  ;;  %s3580_s30 = sshll.u32 %s4931_s25, 3  ;;  %v618_v4 = vld [vmem:[%s4896_s4 + $0x18] sm:$0xff]  ;;  %v617_v8 = vld [vmem:[%s4896_s4 + $0x10] sm:$0xff]  ;;  %vm4265_vm1 = vmmov 0   ;;  %vm793_vm2 = vcmask 64512  }
  0x19   : > { %3853 = vmatpush3.msra.mxu1 %v525_v0  ;;  %s4413_s23 = scalar_lea.vmem %s4892_s0, %s3580_s30  ;;  %s515_s27 = scalar_lea.vmem %s4893_s1, %s3580_s30  ;;  %v616_v9 = vld [vmem:[%s4896_s4 + $0x8] sm:$0xff]  ;;  %v615_v10 = vld [vmem:[%s4896_s4] sm:$0xff]  ;;  %v710_v23 = vld [vmem:[%s4898_s6 + $0x18] sm:$0xff]  ;;  %vm3400_vm3 = vcmask 523264  }
  0x1a   : > { %3854 = vmatprep.subr.mxu1 %v524_v1  ;;  %v4422_v5 = vld [vmem:[%s4413_s23] sm:$0xff]  ;;  %v4429_v7 = vld [vmem:[%s4413_s23 + $0x8] sm:$0xff]  ;;  %v709_v24 = vld [vmem:[%s4898_s6 + $0x10] sm:$0xff]  ;;  %3874 = vmatprep.subr.mxu0 %v710_v23  ;;  %s3500_s25 = sshll.u32 %s504_s29, 4  ;;  %s3713_s30 = sshll.u32 %s4370_s22, 8  ;;  %s4847_s25 = int_to_ptr.vmem [resolvable:$true] %s3500_s25 }
  0x1b   : > { %3855 = vmatpush3.msra.mxu1 %v524_v1  ;;  %v4424_v6 = vld [vmem:[%s515_s27] sm:$0xff]  ;;  %3860 = vmatprep.mubr.msk.f32.mxu1 %vm533_vm0, %v4422_v5  ;;  %v4446_v11 = vld [vmem:[%s515_s27 + $0x8] sm:$0xff]  ;;  %v3609_v46 = vld [vmem:[%s4896_s4 + $0x38] sm:$0xff]  ;;  %s4845_s27 = scalar_lea.hbm %s4907_s15, %s3713_s30  ;;  %s4852_s22 = scalar_lea.sflag [#allocation3], %s502_s20 }
  0x1c   : > { %3856 = vmatprep.subr.mxu1 %v523_v2  ;;  %3882 = vmatprep.mubr.msk.f32.mxu0 %vm533_vm0, %v4424_v6  ;;  %v3586_v16 = vld [vmem:[%s4897_s5] ss:$0 sm:$0xff]  ;;  %v708_v25 = vld [vmem:[%s4898_s6 + $0x8] sm:$0xff]  ;;  %v3601_v49 = vld [vmem:[%s4894_s2 + $0x38] sm:$0xff]  ;;  %s4202_s26 = scalar_lea.vmem %s4847_s25, 256  ;;  %p4209_p0 = scmp.lt.s32.totalorder %s4847_s25, %s4207_s21 }
  0x1d   : > { %3857 = vmatpush3.msra.mxu1 %v523_v2  ;;  %v3583_v18 = vld [vmem:[%s4895_s3] ss:$0 sm:$0xff]  ;;  %3875 = vmatpush3.msra.mxu0 %v710_v23  ;;  %v3608_v54 = vld [vmem:[%s4896_s4 + $0x30] sm:$0xff]  ;;  %v3607_v56 = vld [vmem:[%s4896_s4 + $0x28] sm:$0xff]  ;;  %p4203_p11 = scmp.ne.s32.totalorder %s4847_s25, %s4202_s26  ;;  %p4210_p1 = scmp.lt.s32.totalorder %s4208_s24, %s4202_s26 }
  0x1e   : > { %3858 = vmatprep.subr.mxu1 %v522_v3  ;;  %3876 = vmatprep.subr.mxu0 %v709_v24  ;;  %v707_v26 = vld [vmem:[%s4898_s6] sm:$0xff]  ;;  %v3600_v58 = vld [vmem:[%s4894_s2 + $0x30] sm:$0xff]  ;;  %v3599_v60 = vld [vmem:[%s4894_s2 + $0x28] sm:$0xff] }
  0x1f   : > { %3859 = vmatpush3.msra.mxu1 %v522_v3  ;;  %3877 = vmatpush3.msra.mxu0 %v709_v24  ;;  %v3589_v44 = vld [vmem:[%s4899_s7] ss:$0 sm:$0xff]  ;;  %v3611_v3 = vld [vmem:[%s4897_s5 + $0x1] ss:$0 sm:$0xff]  ;;  %p4204_p12 = pnand %p4203_p11, %p4387_p5  ;;  %p4211_p2 = por %p4210_p1, %p4209_p0 }
  0x20   : > { %3861 = vmatmul.mubr.msk.f32.vlgmr.msra.gmra.mxu1 %vm533_vm0, %v4429_v7  ;;  %3863 = vmatprep.subr.mxu1 %v618_v4  ;;  %v3606_v59 = vld [vmem:[%s4896_s4 + $0x20] sm:$0xff] }
  0x21   : > { %3864 = vmatpush3.msra.mxu1 %v618_v4  ;;  %3871 = vmatprep.mubr.msk.f32.mxu1 %vm533_vm0, %v4424_v6  ;;  %v3598_v61 = vld [vmem:[%s4894_s2 + $0x20] sm:$0xff]  ;;  %p4205_p13 = pneg %p4204_p12 }
  0x22   : > { %3865 = vmatprep.subr.mxu1 %v617_v8  ;;  %3878 = vmatprep.subr.mxu0 %v708_v25 }
  0x23   : > { %3866 = vmatpush3.msra.mxu1 %v617_v8  ;;  %3879 = vmatpush3.msra.mxu0 %v708_v25  ;;  %p4212_p3 = pnand %p4211_p2, %p4205_p13 }
  0x24   : > { %3867 = vmatprep.subr.mxu1 %v616_v9  ;;  %3880 = vmatprep.subr.mxu0 %v707_v26 }
  0x25   : > { %3868 = vmatpush3.msra.mxu1 %v616_v9  ;;  %3881 = vmatpush3.msra.mxu0 %v707_v26 }
  0x26   : > { %3869 = vmatprep.subr.mxu1 %v615_v10  ;;  %3883 = vmatmul.mubr.msk.f32.vlgmr.msra.gmra.mxu0 %vm533_vm0, %v4446_v11 }
  0x27   : > { %3870 = vmatpush3.msra.mxu1 %v615_v10  ;;  %3895 = vmatprep.subr.mxu0 %v4264_v12  ;;  %v3603_v10 = vld [vmem:[%s4895_s3 + $0x1] ss:$0 sm:$0xff] }
  0x28   : > { %3872 = vmatmul.mubr.msk.f32.vlgmr.msra.gmra.mxu1 %vm533_vm0, %v4446_v11  ;;  %3885 = vmatprep.subr.mxu1 %v4264_v12 }
  0x29   : > { %3887 = vmatprep.mubr.msk.f32.mxu1 %vm4265_vm1, %v4264_v12  ;;  %3897 = vmatprep.mubr.msk.f32.mxu0 %vm4265_vm1, %v4264_v12 }
  0xe0   : > { %v3862_v13 = vpop.f32.mrf.mxu1 }
  0xe1   : > { %v612_v22 = vadd.f32 %v3862_v13, %v3583_v18 }
  0xe2   : > { %v606_v14 = vpop.f32.mrf.mxu1 }
  0xe3   : > { %v607_v20 = vadd.f32 %v3583_v18, %v606_v14  ;;  %v3616_v18 = vld [vmem:[%s4898_s6 + $0x30] sm:$0xff] }
  0xe6   : > { %v3884_v43 = vpop.f32.mrf.mxu0 }
  0xe7   : > { %v790_v45 = vadd.f32 %v3884_v43, %v3589_v44 }
  0xe8   : > { %v3873_v15 = vpop.f32.mrf.mxu1  ;;  %v784_v47 = vpop.f32.mrf.mxu0 }
  0xe9   : > { %v704_v21 = vadd.f32 %v3873_v15, %v3586_v16  ;;  %v785_v48 = vadd.f32 %v3589_v44, %v784_v47 }
  0xea   : > { %v698_v17 = vpop.f32.mrf.mxu1 }
  0xeb   : > { %v699_v19 = vadd.f32 %v3586_v16, %v698_v17  ;;  %3896 = vmatpush3.msra.mxu0 %v785_v48  ;;  %v3617_v17 = vld [vmem:[%s4898_s6 + $0x38] sm:$0xff] }
  0xec   : > { %3905 = vmatprep.subr.mxu0 %v3601_v49 }
  0xed   : > { %3886 = vmatpush3.xpose.msk.msra.mxu1 %vm793_vm2, %v699_v19  ;;  %v3615_v19 = vld [vmem:[%s4898_s6 + $0x28] sm:$0xff] }
  0xee   : > { %3890 = vmatprep.subr.mxu1 %v4264_v12 }
  0xf0   : > { %3888 = vmatmul.mubr.msk.f32.vlgmr.msra.gmra.mxu1 %vm793_vm2, %v607_v20  ;;  %v3614_v20 = vld [vmem:[%s4898_s6 + $0x20] sm:$0xff] }
  0xf1   : > { %3891 = vmatpush3.xpose.msk.msra.mxu1 %vm793_vm2, %v704_v21  ;;  %3892 = vmatprep.mubr.msk.f32.mxu1 %vm4265_vm1, %v4264_v12 }
  0xf2   : > { %3900 = vmatprep.subr.mxu1 %v4264_v12 }
  0xf4   : > { %3893 = vmatmul.mubr.msk.f32.vlgmr.msra.gmra.mxu1 %vm793_vm2, %v612_v22 }
  0xf5   : > { %3902 = vmatprep.mubr.msk.f32.mxu1 %vm4265_vm1, %v4264_v12  ;;  %3901 = vmatpush3.msra.mxu1 %v790_v45 }
  0xf6   : > { %3916 = vmatprep.subr.mxu1 %v3609_v46 }
 0x1b0   : > { %v866_v27 = vpop.f32.mrf.mxu1 }
 0x1b1   : > { %v946_v32 = vsel %vm793_vm2, %v866_v27, -inf }
 0x1b2   : > { %v3889_v28 = vpop.f32.mrf.mxu1 }
 0x1b4   : > { %v942_v29 = vpop.f32.mrf.mxu1 }
 0x1b5   : > { %v949_v30 = vsel %vm793_vm2, %v942_v29, -inf }
 0x1b6   : > { %950 = vmax.xlane.f32.xlu0 %v949_v30  ;;  %v3894_v31 = vpop.f32.mrf.mxu1 }
 0x1ba   : > { %947 = vmax.xlane.f32.xlu0 %v946_v32 }
 0x23f   : > { %v951_v33 = vpop.xlane.xlu0 %950 }
 0x240   : > { %v953_v34 = vsub.f32 %v942_v29, %v951_v33 }
 0x242   : > { %v956_v35 = vmul.f32 1.442695, %v953_v34 }
 0x243   : > { %v948_v36 = vpop.xlane.xlu0 %947 }
 0x244   : > { %4168 = vpow2.f32 %v956_v35  ;;  %v952_v37 = vsub.f32 %v866_v27, %v948_v36 }
 0x246   : > { %v954_v38 = vmul.f32 1.442695, %v952_v37 }
 0x248   : > { %4170 = vpow2.f32 %v954_v38  ;;  %v3619_v38 = vld [vmem:[%s4899_s7 + $0x1] ss:$0 sm:$0xff] }
 0x251   : > { %v4169_v39 = vpop.eup %4168 }
 0x252   : > { %v961_v40 = vsel %vm793_vm2, %v4169_v39, 0.0 }
 0x253   : > { %962 = vadd.xlane.f32.xlu1 %v961_v40 }
 0x255   : > { %v4171_v41 = vpop.eup %4170 }
 0x256   : > { %v958_v42 = vsel %vm793_vm2, %v4171_v41, 0.0 }
 0x257   : > { %959 = vadd.xlane.f32.xlu1 %v958_v42  ;;  %v1114_v42 = vld [vmem:[%s4900_s8] sm:$0xff] }
 0x2dc   : > { %v963_v50 = vpop.xlane.xlu1 %962 }
 0x2dd   : > { %4172 = vrcp.f32 %v963_v50  ;;  %v3628_v50 = vld [vmem:[%s4900_s8 + $0x8] sm:$0xff] }
 0x2e0   : > { %v960_v51 = vpop.xlane.xlu1 %959 }
 0x2e1   : > { %4174 = vrcp.f32 %v960_v51  ;;  %v3643_v51 = vld [vmem:[%s4896_s4 + $0x50] sm:$0xff] }
 0x2ea   : > { %v4173_v52 = vpop.eup %4172 }
 0x2eb   : > { %v967_v53 = vmul.f32 %v4173_v52, %v4169_v39  ;;  %v3642_v52 = vld [vmem:[%s4896_s4 + $0x48] sm:$0xff] }
 0x2ed   : > { %3903 = vmatmul.mubr.msk.f32.vlgmr.msra.gmra.mxu1 %vm793_vm2, %v967_v53  ;;  %v3636_v53 = vld [vmem:[%s4894_s2 + $0x58] sm:$0xff] }
 0x2ee   : > { %v4175_v55 = vpop.eup %4174  ;;  %3917 = vmatpush3.msra.mxu1 %v3609_v46  ;;  %3924 = vmatprep.mubr.msk.f32.mxu1 %vm533_vm0, %v4424_v6 }
 0x2ef   : > { %3918 = vmatprep.subr.mxu1 %v3608_v54  ;;  %v966_v57 = vmul.f32 %v4175_v55, %v4171_v41 }
 0x2f0   : > { %3919 = vmatpush3.msra.mxu1 %v3608_v54  ;;  %v3641_v54 = vld [vmem:[%s4896_s4 + $0x40] sm:$0xff] }
 0x2f1   : > { %3920 = vmatprep.subr.mxu1 %v3607_v56  ;;  %3898 = vmatmul.mubr.msk.f32.vlgmr.msra.gmra.mxu0 %vm793_vm2, %v966_v57 }
 0x2f2   : > { %3906 = vmatpush3.msra.mxu0 %v3601_v49  ;;  %3921 = vmatpush3.msra.mxu1 %v3607_v56  ;;  %v3644_v49 = vld [vmem:[%s4896_s4 + $0x58] sm:$0xff] }
 0x2f3   : > { %3907 = vmatprep.subr.mxu0 %v3600_v58  ;;  %3922 = vmatprep.subr.mxu1 %v3606_v59 }
 0x2f4   : > { %3908 = vmatpush3.msra.mxu0 %v3600_v58  ;;  %3923 = vmatpush3.msra.mxu1 %v3606_v59  ;;  %v3635_v58 = vld [vmem:[%s4894_s2 + $0x50] sm:$0xff] }
 0x2f5   : > { %3909 = vmatprep.subr.mxu0 %v3599_v60  ;;  %3925 = vmatmul.mubr.msk.f32.vlgmr.msra.gmra.mxu1 %vm533_vm0, %v4446_v11 }
 0x2f6   : > { %3910 = vmatpush3.msra.mxu0 %v3599_v60  ;;  %3913 = vmatprep.mubr.msk.f32.mxu0 %vm533_vm0, %v4422_v5  ;;  %v3634_v60 = vld [vmem:[%s4894_s2 + $0x48] sm:$0xff] }
 0x2f7   : > { %3911 = vmatprep.subr.mxu0 %v3598_v61  ;;  %3938 = vmatprep.subr.mxu1 %v4264_v12 }
 0x2f8   : > { %3912 = vmatpush3.msra.mxu0 %v3598_v61  ;;  %3940 = vmatprep.mubr.msk.f32.mxu1 %vm4265_vm1, %v4264_v12  ;;  %v3633_v61 = vld [vmem:[%s4894_s2 + $0x40] sm:$0xff] }
 0x2f9   : > { %3914 = vmatmul.mubr.msk.f32.vlgmr.msra.gmra.mxu0 %vm533_vm0, %v4429_v7  ;;  %3927 = vmatprep.subr.mxu0 %v3617_v17 }
 0x2fa   : > { %3935 = vmatprep.mubr.msk.f32.mxu0 %vm533_vm0, %v4424_v6  ;;  %3928 = vmatpush3.msra.mxu0 %v3617_v17  ;;  %v3652_v17 = vld [vmem:[%s4898_s6 + $0x58] sm:$0xff] }
 0x2fb   : > { %3929 = vmatprep.subr.mxu0 %v3616_v18 }
 0x2fc   : > { %3930 = vmatpush3.msra.mxu0 %v3616_v18  ;;  %v3651_v18 = vld [vmem:[%s4898_s6 + $0x50] sm:$0xff] }
 0x2fd   : > { %3931 = vmatprep.subr.mxu0 %v3615_v19 }
 0x2fe   : > { %3932 = vmatpush3.msra.mxu0 %v3615_v19  ;;  %v3650_v19 = vld [vmem:[%s4898_s6 + $0x48] sm:$0xff] }
 0x2ff   : > { %3933 = vmatprep.subr.mxu0 %v3614_v20 }
 0x300   : > { %3934 = vmatpush3.msra.mxu0 %v3614_v20  ;;  %v3649_v20 = vld [vmem:[%s4898_s6 + $0x40] sm:$0xff] }
 0x301   : > { %3936 = vmatmul.mubr.msk.f32.vlgmr.msra.gmra.mxu0 %vm533_vm0, %v4446_v11  ;;  %3948 = vmatprep.subr.mxu0 %v4264_v12 }
 0x302   : > { %3950 = vmatprep.mubr.msk.f32.mxu0 %vm4265_vm1, %v4264_v12 }
 0x3ad   : > { %v4532_v62 = vpop.f32.mrf.mxu1 }
 0x3af   : > { %v3904_v63 = vpop.f32.mrf.mxu1 }
 0x3b1   : > { %v4534_v0 = vpop.f32.mrf.mxu0 }
 0x3b3   : > { %v3899_v1 = vpop.f32.mrf.mxu0 }
 0x3b4   : > { %v3646_v1 = vld [vmem:[%s4897_s5 + $0x2] ss:$0 sm:$0xff] }
 0x3b5   : > { %v3926_v2 = vpop.f32.mrf.mxu1 }
 0x3b6   : > { %v1288_v15 = vadd.f32 %v3926_v2, %v3611_v3 }
 0x3b7   : > { %v1282_v4 = vpop.f32.mrf.mxu1 }
 0x3b8   : > { %v1283_v8 = vadd.f32 %v3611_v3, %v1282_v4 }
 0x3b9   : > { %v3915_v9 = vpop.f32.mrf.mxu0 }
 0x3ba   : > { %3939 = vmatpush3.xpose.msk.msra.mxu1 %vm793_vm2, %v1283_v8  ;;  %v1200_v16 = vadd.f32 %v3915_v9, %v3603_v10 }
 0x3bb   : > { %v1194_v13 = vpop.f32.mrf.mxu0  ;;  %3943 = vmatprep.subr.mxu1 %v4264_v12 }
 0x3bc   : > { %v1195_v14 = vadd.f32 %v3603_v10, %v1194_v13  ;;  %v3638_v13 = vld [vmem:[%s4895_s3 + $0x2] ss:$0 sm:$0xff] }
 0x3be   : > { %3941 = vmatmul.mubr.msk.f32.vlgmr.msra.gmra.mxu1 %vm793_vm2, %v1195_v14 }
 0x3bf   : > { %3944 = vmatpush3.xpose.msk.msra.mxu1 %vm793_vm2, %v1288_v15  ;;  %3945 = vmatprep.mubr.msk.f32.mxu1 %vm4265_vm1, %v4264_v12 }
 0x3c0   : > { %3953 = vmatprep.subr.mxu1 %v4264_v12 }
 0x3c1   : > { %v3937_v37 = vpop.f32.mrf.mxu0 }
 0x3c2   : > { %3946 = vmatmul.mubr.msk.f32.vlgmr.msra.gmra.mxu1 %vm793_vm2, %v1200_v16  ;;  %v1376_v39 = vadd.f32 %v3937_v37, %v3619_v38 }
 0x3c3   : > { %3955 = vmatprep.mubr.msk.f32.mxu1 %vm4265_vm1, %v4264_v12  ;;  %v1370_v40 = vpop.f32.mrf.mxu0 }
 0x3c4   : > { %v1371_v41 = vadd.f32 %v3619_v38, %v1370_v40  ;;  %3954 = vmatpush3.msra.mxu1 %v1376_v39  ;;  %v3654_v38 = vld [vmem:[%s4899_s7 + $0x2] ss:$0 sm:$0xff] }
 0x3c5   : > { %3963 = vmatprep.subr.mxu1 %v1114_v42 }
 0x3c6   : > { %3949 = vmatpush3.msra.mxu0 %v1371_v41 }
 0x3c7   : > { %3958 = vmatprep.subr.mxu0 %v3628_v50 }
 0x47e   : > { %v1451_v21 = vpop.f32.mrf.mxu1 }
 0x47f   : > { %v1531_v22 = vsel %vm793_vm2, %v1451_v21, -inf }
 0x480   : > { %1532 = vmax.xlane.f32.xlu0 %v1531_v22  ;;  %v3942_v23 = vpop.f32.mrf.mxu1 }
 0x482   : > { %v1527_v24 = vpop.f32.mrf.mxu1 }
 0x483   : > { %v1534_v25 = vsel %vm793_vm2, %v1527_v24, -inf }
 0x484   : > { %1535 = vmax.xlane.f32.xlu1 %v1534_v25  ;;  %v3947_v26 = vpop.f32.mrf.mxu1 }
 0x509   : > { %v1533_v27 = vpop.xlane.xlu0 %1532 }
 0x50a   : > { %v1537_v28 = vsub.f32 %v1451_v21, %v1533_v27 }
 0x50c   : > { %v1539_v29 = vmul.f32 1.442695, %v1537_v28 }
 0x50d   : > { %v1536_v30 = vpop.xlane.xlu1 %1535 }
 0x50e   : > { %4176 = vpow2.f32 %v1539_v29  ;;  %v1538_v31 = vsub.f32 %v1527_v24, %v1536_v30 }
 0x510   : > { %v1541_v32 = vmul.f32 1.442695, %v1538_v31 }
 0x512   : > { %4178 = vpow2.f32 %v1541_v32 }
 0x51b   : > { %v4177_v33 = vpop.eup %4176 }
 0x51c   : > { %v1543_v34 = vsel %vm793_vm2, %v4177_v33, 0.0 }
 0x51d   : > { %1544 = vadd.xlane.f32.xlu0 %v1543_v34 }
 0x51f   : > { %v4179_v35 = vpop.eup %4178 }
 0x520   : > { %v1546_v36 = vsel %vm793_vm2, %v4179_v35, 0.0 }
 0x521   : > { %1547 = vadd.xlane.f32.xlu1 %v1546_v36 }
 0x5a6   : > { %v1545_v43 = vpop.xlane.xlu0 %1544 }
 0x5a7   : > { %4180 = vrcp.f32 %v1545_v43 }
 0x5aa   : > { %v1548_v44 = vpop.xlane.xlu1 %1547 }
 0x5ab   : > { %4182 = vrcp.f32 %v1548_v44 }
 0x5b4   : > { %v4181_v45 = vpop.eup %4180 }
 0x5b5   : > { %v1551_v46 = vmul.f32 %v4181_v45, %v4177_v33 }
 0x5b7   : > { %3951 = vmatmul.mubr.msk.f32.vlgmr.msra.gmra.mxu0 %vm793_vm2, %v1551_v46 }
 0x5b8   : > { %v4183_v47 = vpop.eup %4182  ;;  %3959 = vmatpush3.msra.mxu0 %v3628_v50  ;;  %v3669_v50 = vld [vmem:[%s4894_s2 + $0x78] sm:$0xff] }
 0x5b9   : > { %v1552_v48 = vmul.f32 %v4183_v47, %v4179_v35  ;;  %3968 = vmatprep.subr.mxu0 %v3636_v53 }
 0x5bb   : > { %3956 = vmatmul.mubr.msk.f32.vlgmr.msra.gmra.mxu1 %vm793_vm2, %v1552_v48  ;;  %v3663_v48 = vld [vmem:[%s4900_s8 + $0x10] sm:$0xff] }
 0x5bc   : > { %3965 = vmatprep.mubr.msk.f32.mxu1 %vm793_vm2, %v4534_v0  ;;  %3964 = vmatpush3.msra.mxu1 %v1114_v42 }
 0x5bd   : > { %3979 = vmatprep.subr.mxu1 %v3644_v49 }
 0x5bf   : > { %3966 = vmatmul.mubr.msk.f32.vlgmr.msra.gmra.mxu1 %vm793_vm2, %v4532_v62 }
 0x5c0   : > { %3980 = vmatpush3.msra.mxu1 %v3644_v49  ;;  %3987 = vmatprep.mubr.msk.f32.mxu1 %vm533_vm0, %v4424_v6  ;;  %v3677_v49 = vld [vmem:[%s4896_s4 + $0x78] sm:$0xff] }
 0x5c1   : > { %3981 = vmatprep.subr.mxu1 %v3643_v51 }
 0x5c2   : > { %3982 = vmatpush3.msra.mxu1 %v3643_v51  ;;  %v3668_v51 = vld [vmem:[%s4894_s2 + $0x70] sm:$0xff] }
 0x5c3   : > { %3983 = vmatprep.subr.mxu1 %v3642_v52 }
 0x5c4   : > { %3984 = vmatpush3.msra.mxu1 %v3642_v52  ;;  %v3667_v52 = vld [vmem:[%s4894_s2 + $0x68] sm:$0xff] }
 0x5c5   : > { %3985 = vmatprep.subr.mxu1 %v3641_v54 }
 0x5c6   : > { %3986 = vmatpush3.msra.mxu1 %v3641_v54 }
 0x5c7   : > { %3988 = vmatmul.mubr.msk.f32.vlgmr.msra.gmra.mxu1 %vm533_vm0, %v4446_v11  ;;  %4001 = vmatprep.subr.mxu1 %v4264_v12 }
 0x5c8   : > { %4003 = vmatprep.mubr.msk.f32.mxu1 %vm4265_vm1, %v4264_v12 }
 0x677   : > { %v1622_v55 = vpop.f32.mrf.mxu0 }
 0x678   : > { %3960 = vmatprep.mubr.msk.f32.mxu0 %vm793_vm2, %v1622_v55 }
 0x679   : > { %v3952_v56 = vpop.f32.mrf.mxu0 }
 0x67b   : > { %v1695_v57 = vpop.f32.mrf.mxu1 }
 0x67c   : > { %3961 = vmatmul.mubr.msk.f32.vlgmr.msra.gmra.mxu0 %vm793_vm2, %v1695_v57  ;;  %v3676_v57 = vld [vmem:[%s4896_s4 + $0x70] sm:$0xff] }
 0x67d   : > { %3969 = vmatpush3.msra.mxu0 %v3636_v53  ;;  %v3957_v59 = vpop.f32.mrf.mxu1  ;;  %3976 = vmatprep.mubr.msk.f32.mxu0 %vm533_vm0, %v4422_v5  ;;  %v3666_v53 = vld [vmem:[%s4894_s2 + $0x60] sm:$0xff] }
 0x67e   : > { %3970 = vmatprep.subr.mxu0 %v3635_v58  ;;  %v3675_v59 = vld [vmem:[%s4896_s4 + $0x68] sm:$0xff] }
 0x67f   : > { %3971 = vmatpush3.msra.mxu0 %v3635_v58  ;;  %v4627_v62 = vpop.f32.mrf.mxu1 }
 0x680   : > { %3972 = vmatprep.subr.mxu0 %v3634_v60 }
 0x681   : > { %3973 = vmatpush3.msra.mxu0 %v3634_v60  ;;  %v4629_v63 = vpop.f32.mrf.mxu1  ;;  %v3674_v60 = vld [vmem:[%s4896_s4 + $0x60] sm:$0xff] }
 0x682   : > { %3974 = vmatprep.subr.mxu0 %v3633_v61 }
 0x683   : > { %3975 = vmatpush3.msra.mxu0 %v3633_v61 }
 0x684   : > { %3977 = vmatmul.mubr.msk.f32.vlgmr.msra.gmra.mxu0 %vm533_vm0, %v4429_v7  ;;  %3990 = vmatprep.subr.mxu0 %v3652_v17 }
 0x685   : > { %3998 = vmatprep.mubr.msk.f32.mxu0 %vm533_vm0, %v4424_v6  ;;  %3991 = vmatpush3.msra.mxu0 %v3652_v17  ;;  %v3685_v17 = vld [vmem:[%s4898_s6 + $0x78] sm:$0xff] }
 0x686   : > { %3992 = vmatprep.subr.mxu0 %v3651_v18 }
 0x687   : > { %v3989_v0 = vpop.f32.mrf.mxu1  ;;  %3993 = vmatpush3.msra.mxu0 %v3651_v18  ;;  %v3684_v18 = vld [vmem:[%s4898_s6 + $0x70] sm:$0xff] }
 0x688   : > { %v2036_v2 = vadd.f32 %v3989_v0, %v3646_v1  ;;  %3994 = vmatprep.subr.mxu0 %v3650_v19 }
 0x689   : > { %v2030_v3 = vpop.f32.mrf.mxu1  ;;  %3995 = vmatpush3.msra.mxu0 %v3650_v19  ;;  %v3683_v19 = vld [vmem:[%s4898_s6 + $0x68] sm:$0xff] }
 0x68a   : > { %v2031_v4 = vadd.f32 %v3646_v1, %v2030_v3  ;;  %3996 = vmatprep.subr.mxu0 %v3649_v20 }
 0x68b   : > { %3997 = vmatpush3.msra.mxu0 %v3649_v20  ;;  %v3682_v20 = vld [vmem:[%s4898_s6 + $0x60] sm:$0xff] }
 0x68c   : > { %4002 = vmatpush3.xpose.msk.msra.mxu1 %vm793_vm2, %v2031_v4  ;;  %3999 = vmatmul.mubr.msk.f32.vlgmr.msra.gmra.mxu0 %vm533_vm0, %v4446_v11 }
 0x68d   : > { %4006 = vmatprep.subr.mxu1 %v4264_v12  ;;  %4011 = vmatprep.subr.mxu0 %v4264_v12 }
 0x68e   : > { %4013 = vmatprep.mubr.msk.f32.mxu0 %vm4265_vm1, %v4264_v12 }
 0x73c   : > { %v4636_v8 = vpop.f32.mrf.mxu0 }
 0x73e   : > { %v4638_v9 = vpop.f32.mrf.mxu0 }
 0x73f   : > { %v1855_v0 = vadd.f32 %v4629_v63, %v4638_v9 }
 0x744   : > { %v3978_v10 = vpop.f32.mrf.mxu0 }
 0x745   : > { %v1948_v16 = vadd.f32 %v3978_v10, %v3638_v13 }
 0x746   : > { %v1942_v14 = vpop.f32.mrf.mxu0 }
 0x747   : > { %v1943_v15 = vadd.f32 %v3638_v13, %v1942_v14  ;;  %v3679_v13 = vld [vmem:[%s4897_s5 + $0x3] ss:$0 sm:$0xff] }
 0x749   : > { %4004 = vmatmul.mubr.msk.f32.vlgmr.msra.gmra.mxu1 %vm793_vm2, %v1943_v15 }
 0x74a   : > { %4007 = vmatpush3.xpose.msk.msra.mxu1 %vm793_vm2, %v2036_v2  ;;  %4008 = vmatprep.mubr.msk.f32.mxu1 %vm4265_vm1, %v4264_v12 }
 0x74b   : > { %4016 = vmatprep.subr.mxu1 %v4264_v12 }
 0x74c   : > { %v4000_v37 = vpop.f32.mrf.mxu0 }
 0x74d   : > { %4009 = vmatmul.mubr.msk.f32.vlgmr.msra.gmra.mxu1 %vm793_vm2, %v1948_v16  ;;  %v2124_v39 = vadd.f32 %v4000_v37, %v3654_v38 }
 0x74e   : > { %4018 = vmatprep.mubr.msk.f32.mxu1 %vm4265_vm1, %v4264_v12  ;;  %v2118_v40 = vpop.f32.mrf.mxu0 }
 0x74f   : > { %v2119_v41 = vadd.f32 %v3654_v38, %v2118_v40  ;;  %4017 = vmatpush3.msra.mxu1 %v2124_v39 }
 0x750   : > { %4026 = vmatprep.subr.mxu1 %v3669_v50 }
 0x751   : > { %4012 = vmatpush3.msra.mxu0 %v2119_v41 }
 0x752   : > { %4021 = vmatprep.subr.mxu0 %v3663_v48 }
 0x809   : > { %v2199_v21 = vpop.f32.mrf.mxu1 }
 0x80a   : > { %v2279_v22 = vsel %vm793_vm2, %v2199_v21, -inf }
 0x80b   : > { %2280 = vmax.xlane.f32.xlu0 %v2279_v22  ;;  %v4005_v23 = vpop.f32.mrf.mxu1 }
 0x80d   : > { %v2275_v24 = vpop.f32.mrf.mxu1 }
 0x80e   : > { %v2282_v25 = vsel %vm793_vm2, %v2275_v24, -inf }
 0x80f   : > { %2283 = vmax.xlane.f32.xlu1 %v2282_v25  ;;  %v4010_v26 = vpop.f32.mrf.mxu1 }
 0x894   : > { %v2281_v27 = vpop.xlane.xlu0 %2280 }
 0x895   : > { %v2285_v28 = vsub.f32 %v2199_v21, %v2281_v27 }
 0x897   : > { %v2287_v29 = vmul.f32 1.442695, %v2285_v28 }
 0x898   : > { %v2284_v30 = vpop.xlane.xlu1 %2283 }
 0x899   : > { %4184 = vpow2.f32 %v2287_v29  ;;  %v2286_v31 = vsub.f32 %v2275_v24, %v2284_v30 }
 0x89b   : > { %v2289_v32 = vmul.f32 1.442695, %v2286_v31 }
 0x89d   : > { %4186 = vpow2.f32 %v2289_v32 }
 0x8a6   : > { %v4185_v33 = vpop.eup %4184 }
 0x8a7   : > { %v2291_v34 = vsel %vm793_vm2, %v4185_v33, 0.0 }
 0x8a8   : > { %2292 = vadd.xlane.f32.xlu0 %v2291_v34 }
 0x8aa   : > { %v4187_v35 = vpop.eup %4186 }
 0x8ab   : > { %v2294_v36 = vsel %vm793_vm2, %v4187_v35, 0.0 }
 0x8ac   : > { %2295 = vadd.xlane.f32.xlu1 %v2294_v36  ;;  %v3687_v36 = vld [vmem:[%s4899_s7 + $0x3] ss:$0 sm:$0xff] }
 0x931   : > { %v2293_v42 = vpop.xlane.xlu0 %2292 }
 0x932   : > { %4188 = vrcp.f32 %v2293_v42 }
 0x935   : > { %v2296_v43 = vpop.xlane.xlu1 %2295 }
 0x936   : > { %4190 = vrcp.f32 %v2296_v43 }
 0x93f   : > { %v4189_v44 = vpop.eup %4188 }
 0x940   : > { %v2299_v45 = vmul.f32 %v4189_v44, %v4185_v33 }
 0x942   : > { %4014 = vmatmul.mubr.msk.f32.vlgmr.msra.gmra.mxu0 %vm793_vm2, %v2299_v45 }
 0x943   : > { %v4191_v46 = vpop.eup %4190  ;;  %4022 = vmatpush3.msra.mxu0 %v3663_v48 }
 0x944   : > { %v2300_v47 = vmul.f32 %v4191_v46, %v4187_v35  ;;  %4037 = vmatprep.subr.mxu0 %v3677_v49  ;;  %v3696_v46 = vld [vmem:[%s4900_s8 + $0x18] sm:$0xff] }
 0x946   : > { %4019 = vmatmul.mubr.msk.f32.vlgmr.msra.gmra.mxu1 %vm793_vm2, %v2300_v47  ;;  %v3213_v47 = vld [vmem:[%s4902_s10 + $0x18] sm:$0xff] }
 0x947   : > { %4034 = vmatprep.mubr.msk.f32.mxu1 %vm533_vm0, %v4422_v5  ;;  %4027 = vmatpush3.msra.mxu1 %v3669_v50 }
 0x948   : > { %4028 = vmatprep.subr.mxu1 %v3668_v51 }
 0x949   : > { %4029 = vmatpush3.msra.mxu1 %v3668_v51 }
 0x94a   : > { %4030 = vmatprep.subr.mxu1 %v3667_v52 }
 0x94b   : > { %4031 = vmatpush3.msra.mxu1 %v3667_v52  ;;  %v3217_v52 = vld [vmem:[%s4903_s11 + $0x18] sm:$0xff] }
 0x94c   : > { %4032 = vmatprep.subr.mxu1 %v3666_v53 }
 0x94d   : > { %4033 = vmatpush3.msra.mxu1 %v3666_v53  ;;  %v3212_v53 = vld [vmem:[%s4902_s10 + $0x10] sm:$0xff] }
 0x94e   : > { %4035 = vmatmul.mubr.msk.f32.vlgmr.msra.gmra.mxu1 %vm533_vm0, %v4429_v7  ;;  %4048 = vmatprep.subr.mxu1 %v3685_v17 }
 0x94f   : > { %4056 = vmatprep.mubr.msk.f32.mxu1 %vm533_vm0, %v4424_v6  ;;  %4049 = vmatpush3.msra.mxu1 %v3685_v17 }
 0x950   : > { %4050 = vmatprep.subr.mxu1 %v3684_v18 }
 0x951   : > { %4051 = vmatpush3.msra.mxu1 %v3684_v18 }
 0x952   : > { %4052 = vmatprep.subr.mxu1 %v3683_v19 }
 0x953   : > { %4053 = vmatpush3.msra.mxu1 %v3683_v19 }
 0x954   : > { %4054 = vmatprep.subr.mxu1 %v3682_v20 }
 0x955   : > { %4055 = vmatpush3.msra.mxu1 %v3682_v20 }
 0x956   : > { %4057 = vmatmul.mubr.msk.f32.vlgmr.msra.gmra.mxu1 %vm533_vm0, %v4446_v11  ;;  %4069 = vmatprep.subr.mxu1 %v4264_v12 }
 0x957   : > { %4071 = vmatprep.mubr.msk.f32.mxu1 %vm4265_vm1, %v4264_v12 }
 0xa02   : > { %v2370_v54 = vpop.f32.mrf.mxu0 }
 0xa03   : > { %4023 = vmatprep.mubr.msk.f32.mxu0 %vm793_vm2, %v2370_v54  ;;  %v3216_v54 = vld [vmem:[%s4903_s11 + $0x10] sm:$0xff] }
 0xa04   : > { %v4015_v55 = vpop.f32.mrf.mxu0 }
 0xa05   : > { %v3215_v55 = vld [vmem:[%s4903_s11 + $0x8] sm:$0xff] }
 0xa06   : > { %v2443_v56 = vpop.f32.mrf.mxu1 }
 0xa07   : > { %4024 = vmatmul.mubr.msk.f32.vlgmr.msra.gmra.mxu0 %vm793_vm2, %v2443_v56  ;;  %v3210_v56 = vld [vmem:[%s4902_s10] sm:$0xff] }
 0xa08   : > { %4038 = vmatpush3.msra.mxu0 %v3677_v49  ;;  %v4020_v58 = vpop.f32.mrf.mxu1  ;;  %4045 = vmatprep.mubr.msk.f32.mxu0 %vm533_vm0, %v4424_v6  ;;  %v1860_v6 = vadd.f32 %v4627_v62, %v4636_v8  ;;  %v3671_v62 = vld [vmem:[%s4895_s3 + $0x3] ss:$0 sm:$0xff] }
 0xa09   : > { %4039 = vmatprep.subr.mxu0 %v3676_v57  ;;  %v3392_v58 = vld [vmem:[%s4905_s13 + $0x38] sm:$0xff] }
 0xa0a   : > { %4040 = vmatpush3.msra.mxu0 %v3676_v57  ;;  %v3214_v57 = vld [vmem:[%s4903_s11] sm:$0xff] }
 0xa0b   : > { %4041 = vmatprep.subr.mxu0 %v3675_v59 }
 0xa0c   : > { %4042 = vmatpush3.msra.mxu0 %v3675_v59 }
 0xa0d   : > { %4043 = vmatprep.subr.mxu0 %v3674_v60 }
 0xa0e   : > { %4044 = vmatpush3.msra.mxu0 %v3674_v60  ;;  %v4036_v4 = vpop.f32.mrf.mxu1 }
 0xa0f   : > { %4046 = vmatmul.mubr.msk.f32.vlgmr.msra.gmra.mxu0 %vm533_vm0, %v4446_v11  ;;  %4059 = vmatprep.subr.mxu0 %v4264_v12  ;;  %v2617_v16 = vadd.f32 %v4036_v4, %v3671_v62 }
 0xa10   : > { %4061 = vmatprep.mubr.msk.f32.mxu0 %vm4265_vm1, %v4264_v12  ;;  %v2611_v15 = vpop.f32.mrf.mxu1 }
 0xa11   : > { %v2612_v63 = vadd.f32 %v3671_v62, %v2611_v15  ;;  %v3385_v62 = vld [vmem:[%s4905_s13] sm:$0xff] }
 0xa16   : > { %v4058_v35 = vpop.f32.mrf.mxu1 }
 0xa17   : > { %v2793_v37 = vadd.f32 %v4058_v35, %v3687_v36 }
 0xa18   : > { %v2787_v38 = vpop.f32.mrf.mxu1 }
 0xa19   : > { %v2788_v39 = vadd.f32 %v3687_v36, %v2787_v38 }
 0xa1b   : > { %4070 = vmatpush3.msra.mxu1 %v2788_v39 }
 0xa1c   : > { %4079 = vmatprep.subr.mxu1 %v3696_v46 }
 0xac7   : > { %v4025_v61 = vpop.f32.mrf.mxu0 }
 0xac8   : > { %v4723_v1 = vadd.f32 %v4025_v61, %v1860_v6  ;;  %v3699_v61 = vld [vmem:[%s4901_s9] ss:$0 sm:$0xff] }
 0xac9   : > { %v2521_v2 = vpop.f32.mrf.mxu0 }
 0xaca   : > { %v4725_v3 = vadd.f32 %v2521_v2, %v1855_v0 }
 0xacf   : > { %v4047_v10 = vpop.f32.mrf.mxu0 }
 0xad0   : > { %v2705_v9 = vadd.f32 %v4047_v10, %v3679_v13  ;;  %v3388_v10 = vld [vmem:[%s4905_s13 + $0x18] sm:$0xff] }
 0xad1   : > { %v2699_v14 = vpop.f32.mrf.mxu0 }
 0xad2   : > { %v2700_v8 = vadd.f32 %v3679_v13, %v2699_v14  ;;  %v3387_v13 = vld [vmem:[%s4905_s13 + $0x10] sm:$0xff]  ;;  %v3386_v14 = vld [vmem:[%s4905_s13 + $0x8] sm:$0xff] }
 0xad4   : > { %4060 = vmatpush3.xpose.msk.msra.mxu0 %vm793_vm2, %v2700_v8 }
 0xad5   : > { %4064 = vmatprep.subr.mxu0 %v4264_v12 }
 0xad7   : > { %4062 = vmatmul.mubr.msk.f32.vlgmr.msra.gmra.mxu0 %vm793_vm2, %v2612_v63 }
 0xad8   : > { %4065 = vmatpush3.xpose.msk.msra.mxu0 %vm793_vm2, %v2705_v9  ;;  %4066 = vmatprep.mubr.msk.f32.mxu0 %vm4265_vm1, %v4264_v12  ;;  %v3704_v9 = vld [vmem:[%s4904_s12] ss:$0 sm:$0xff] }
 0xad9   : > { %4074 = vmatprep.subr.mxu0 %v4264_v12 }
 0xadb   : > { %4067 = vmatmul.mubr.msk.f32.vlgmr.msra.gmra.mxu0 %vm793_vm2, %v2617_v16 }
 0xadc   : > { %4076 = vmatprep.mubr.msk.f32.mxu0 %vm4265_vm1, %v4264_v12  ;;  %4075 = vmatpush3.msra.mxu0 %v2793_v37 }
 0xadd   : > { %4084 = vmatprep.subr.mxu0 %v3217_v52 }
 0xb97   : > { %v2868_v21 = vpop.f32.mrf.mxu0 }
 0xb98   : > { %v2948_v22 = vsel %vm793_vm2, %v2868_v21, -inf }
 0xb99   : > { %2949 = vmax.xlane.f32.xlu0 %v2948_v22  ;;  %v4063_v23 = vpop.f32.mrf.mxu0 }
 0xb9a   : > { %v3705_v23 = vld [vmem:[%s4906_s14] ss:$0 sm:$0xff] }
 0xb9b   : > { %v2944_v24 = vpop.f32.mrf.mxu0 }
 0xb9c   : > { %v2951_v25 = vsel %vm793_vm2, %v2944_v24, -inf }
 0xb9d   : > { %2952 = vmax.xlane.f32.xlu1 %v2951_v25  ;;  %v4068_v26 = vpop.f32.mrf.mxu0 }
 0xc22   : > { %v2950_v27 = vpop.xlane.xlu0 %2949 }
 0xc23   : > { %v2954_v28 = vsub.f32 %v2868_v21, %v2950_v27  ;;  %v4200_v27 = vld [vmem:[%s4413_s23 + $0x8] sm:$0xff] }
 0xc25   : > { %v2956_v29 = vmul.f32 1.442695, %v2954_v28 }
 0xc26   : > { %v2953_v30 = vpop.xlane.xlu1 %2952 }
 0xc27   : > { %4192 = vpow2.f32 %v2956_v29  ;;  %v2955_v11 = vsub.f32 %v2944_v24, %v2953_v30  ;;  %v4201_v30 = vld [vmem:[%s4413_s23] sm:$0xff] }
 0xc29   : > { %v2958_v31 = vmul.f32 1.442695, %v2955_v11 }
 0xc2b   : > { %4194 = vpow2.f32 %v2958_v31 }
 0xc34   : > { %v4193_v32 = vpop.eup %4192 }
 0xc35   : > { %v2960_v12 = vsel %vm793_vm2, %v4193_v32, 0.0 }
 0xc36   : > { %2961 = vadd.xlane.f32.xlu0 %v2960_v12 }
 0xc38   : > { %v4195_v33 = vpop.eup %4194 }
 0xc39   : > { %v2963_v34 = vsel %vm793_vm2, %v4195_v33, 0.0 }
 0xc3a   : > { %2964 = vadd.xlane.f32.xlu1 %v2963_v34 }
 0xcbf   : > { %v2962_v40 = vpop.xlane.xlu0 %2961 }
 0xcc0   : > { %4196 = vrcp.f32 %v2962_v40 }
 0xcc3   : > { %v2965_v41 = vpop.xlane.xlu1 %2964 }
 0xcc4   : > { %4198 = vrcp.f32 %v2965_v41 }
 0xccd   : > { %v4197_v42 = vpop.eup %4196 }
 0xcce   : > { %v2968_v43 = vmul.f32 %v4197_v42, %v4193_v32 }
 0xcd0   : > { %4072 = vmatmul.mubr.msk.f32.vlgmr.msra.gmra.mxu1 %vm793_vm2, %v2968_v43 }
 0xcd1   : > { %v4199_v44 = vpop.eup %4198  ;;  %4080 = vmatpush3.msra.mxu1 %v3696_v46 }
 0xcd2   : > { %v2969_v45 = vmul.f32 %v4199_v44, %v4195_v33  ;;  %4095 = vmatprep.subr.mxu1 %v3213_v47 }
 0xcd4   : > { %4077 = vmatmul.mubr.msk.f32.vlgmr.msra.gmra.mxu0 %vm793_vm2, %v2969_v45 }
 0xcd5   : > { %4085 = vmatpush3.msra.mxu0 %v3217_v52 }
 0xcd6   : > { %4086 = vmatprep.subr.mxu0 %v3216_v54 }
 0xcd7   : > { %4087 = vmatpush3.msra.mxu0 %v3216_v54 }
 0xcd8   : > { %4088 = vmatprep.subr.mxu0 %v3215_v55 }
 0xcd9   : > { %4089 = vmatpush3.msra.mxu0 %v3215_v55 }
 0xcda   : > { %4090 = vmatprep.subr.mxu0 %v3214_v57 }
 0xcdb   : > { %4091 = vmatpush3.msra.mxu0 %v3214_v57 }
 0xcdc   : > { %4106 = vmatprep.subr.mxu0 %v3392_v58 }
 0xd90   : > { %v3039_v48 = vpop.f32.mrf.mxu1 }
 0xd91   : > { %4081 = vmatprep.mubr.msk.f32.mxu1 %vm793_vm2, %v3039_v48 }
 0xd92   : > { %v4073_v49 = vpop.f32.mrf.mxu1 }
 0xd94   : > { %v3112_v50 = vpop.f32.mrf.mxu0 }
 0xd95   : > { %4082 = vmatmul.mubr.msk.f32.vlgmr.msra.gmra.mxu1 %vm793_vm2, %v3112_v50 }
 0xd96   : > { %v4078_v51 = vpop.f32.mrf.mxu0  ;;  %4096 = vmatpush3.msra.mxu1 %v3213_v47  ;;  %4103 = vmatprep.mubr.msk.f32.mxu1 %vm533_vm0, %v4422_v5  ;;  %v3211_v5 = vld [vmem:[%s4902_s10 + $0x8] sm:$0xff] }
 0xd97   : > { %4097 = vmatprep.subr.mxu1 %v3212_v53 }
 0xd98   : > { %4098 = vmatpush3.msra.mxu1 %v3212_v53 }
 0xd99   : > { %4099 = vmatprep.subr.mxu1 %v3211_v5 }
 0xd9a   : > { %4100 = vmatpush3.msra.mxu1 %v3211_v5 }
 0xd9b   : > { %4101 = vmatprep.subr.mxu1 %v3210_v56 }
 0xd9c   : > { %4102 = vmatpush3.msra.mxu1 %v3210_v56 }
 0xd9d   : > { %4104 = vmatmul.mubr.msk.f32.vlgmr.msra.gmra.mxu1 %vm533_vm0, %v4429_v7  ;;  %v3391_v7 = vld [vmem:[%s4905_s13 + $0x30] sm:$0xff] }
 0xe55   : > { %v4083_v59 = vpop.f32.mrf.mxu1 }
 0xe56   : > { %v3200_v60 = vadd.f32 %v4083_v59, %v4723_v1  ;;  %v3390_v1 = vld [vmem:[%s4905_s13 + $0x28] sm:$0xff] }
 0xe57   : > { %v3190_v6 = vpop.f32.mrf.mxu1 }
 0xe58   : > { %v3199_v0 = vadd.f32 %v3190_v6, %v4725_v3  ;;  %v3209_v4 = vadd.f32 %v3699_v61, %v3200_v60  ;;  %v3389_v3 = vld [vmem:[%s4905_s13 + $0x20] sm:$0xff] }
 0xe5a   : > { %v3208_v2 = vadd.f32 %v3699_v61, %v3199_v0 }
 0xe5c   : > { %4092 = vmatprep.mubr.msk.f32.mxu0 %vm533_vm0, %v3208_v2 }
 0xe5d   : > { %4093 = vmatmul.mubr.msk.f32.vlgmr.msra.gmra.mxu0 %vm533_vm0, %v3209_v4  ;;  %v4105_v8 = vpop.f32.mrf.mxu1 }
 0xe5e   : > { %4107 = vmatpush3.msra.mxu0 %v3392_v58 }
 0xe5f   : > { %4108 = vmatprep.subr.mxu0 %v3391_v7  ;;  %v3365_v16 = vpop.f32.mrf.mxu1 }
 0xe60   : > { %4109 = vmatpush3.msra.mxu0 %v3391_v7 }
 0xe61   : > { %4110 = vmatprep.subr.mxu0 %v3390_v1 }
 0xe62   : > { %4111 = vmatpush3.msra.mxu0 %v3390_v1 }
 0xe63   : > { %4112 = vmatprep.subr.mxu0 %v3389_v3 }
 0xe64   : > { %4113 = vmatpush3.msra.mxu0 %v3389_v3 }
 0xe65   : > { %4114 = vmatprep.subr.mxu0 %v3388_v10 }
 0xe66   : > { %4115 = vmatpush3.msra.mxu0 %v3388_v10 }
 0xe67   : > { %4116 = vmatprep.subr.mxu0 %v3387_v13 }
 0xe68   : > { %4117 = vmatpush3.msra.mxu0 %v3387_v13 }
 0xe69   : > { %4118 = vmatprep.subr.mxu0 %v3386_v14 }
 0xe6a   : > { %4119 = vmatpush3.msra.mxu0 %v3386_v14 }
 0xe6b   : > { %4120 = vmatprep.subr.mxu0 %v3385_v62 }
 0xe6c   : > { %4121 = vmatpush3.msra.mxu0 %v3385_v62 }
 0xf1d   : > { %v4094_v15 = vpop.f32.mrf.mxu0 }
 0xf1e   : > { %v3371_v63 = vadd.f32 %v4105_v8, %v4094_v15 }
 0xf1f   : > { %v3290_v17 = vpop.f32.mrf.mxu0 }
 0xf20   : > { %v3366_v18 = vadd.f32 %v3365_v16, %v3290_v17  ;;  %v3382_v19 = vadd.f32 %v3704_v9, %v3371_v63 }
 0xf22   : > { %v3381_v20 = vadd.f32 %v3704_v9, %v3366_v18  ;;  %v3384_v22 = vmax.f32 %v3382_v19, 0.0 }
 0xf24   : > { %v3383_v21 = vmax.f32 %v3381_v20, 0.0 }
 0xf26   : > { %4122 = vmatprep.mubr.msk.f32.mxu0 %vm3400_vm3, %v3383_v21 }
 0xf27   : > { %4123 = vmatmul.mubr.msk.f32.vlgmr.msra.gmra.mxu0 %vm3400_vm3, %v3384_v22 }
 0xfe7   : > { %v4124_v24 = vpop.f32.mrf.mxu0 }
 0xfe8   : > { %v3479_v25 = vadd.f32 %v4124_v24, %v3705_v23 }
 0xfe9   : > { %v3473_v26 = vpop.f32.mrf.mxu0 }
 0xfea   : > { %v3483_v28 = vadd.f32 %v4200_v27, %v3479_v25  ;;  %v3474_v29 = vadd.f32 %v3705_v23, %v3473_v26 }
 0xfec   : > { %3485 = vst.msk [vmem:[%s504_s29 + $0x8] sm:$0xff] %vm533_vm0, %v3483_v28  ;;  %v3482_v11 = vadd.f32 %v4201_v30, %v3474_v29 }
 0xfee   : > { %3484 = vst.msk [vmem:[%s504_s29] sm:$0xff] %vm533_vm0, %v3482_v11 }
 0xfef   : > { %4215 = shalt.err (!%p4212_p3)
}
 0xff0   : > { %s4216_s23 = scalar_lea.hbm %s4845_s27, 256  ;;  %s4220_s30 = scalar_lea.hbm %s4907_s15, 512 }
 0xff1   : > { %p4217_p4 = scmp.ne.s32.totalorder %s4845_s27, %s4216_s23  ;;  %p4221_p9 = scmp.lt.s32.totalorder %s4845_s27, %s4907_s15 }
 0xff2   : > { %p4222_p10 = scmp.lt.s32.totalorder %s4220_s30, %s4216_s23 }
 0xff3   : > { %p4218_p7 = pnand %p4217_p4, %p4387_p5 }
 0xff4   : > { %p4223_p11 = por %p4222_p10, %p4221_p9 }
 0xff5   : > { %p4219_p8 = pneg %p4218_p7 }
 0xff7   : > { %p4224_p12 = pnand %p4223_p11, %p4219_p8 }
 0xff9   : > { %4227 = shalt.err (!%p4224_p12)
}
 0xffa   : > { %s4267_s26 = smov 128   ;;  %s4268_s18 = smov 8  }
 0xffb   : > { %4125 = dma.vmem_to_hbm [thread:$0]  (%p4387_p5), %s4847_s25, 256, %s4845_s27, %s4852_s22, %s4267_s26, %s4267_s26, %s4268_s18  }
 0xffc PF: > { %s4922_s21 = sld [smem:[#allocation7_spill]] }
 0xffd   : > { %s4923_s24 = sld [smem:[#allocation5_spill]] }
0x1002   : > { %p4131_p13 = scmp.ge.s32.totalorder %s4922_s21, 2 }
0x1003   : > { %s3515_s29 = sand.u32 1, %s4923_s24  }
0x1004   : > { %p4128_p0 = pnand %p4131_p13, %p4391_p6  ;;  %s3516_s23 = scalar_lea.sflag [#allocation3], %s3515_s29 }
0x1006   : > { %p4129_p1 = pneg %p4128_p0 }
0x1008   : > { %4245 = dma.done.wait (%p4129_p1), %s3516_s23, 256  }
0x1009   : > { %4247 = vsyncadd (%p4129_p1), %s3516_s23, 4294967040  ;;  %s4925_s21 = sld [smem:[#allocation8_spill]]  ;;  %s4928_s18 = smov %s4254_s19 }
0x100a   : > { %s4926_s30 = sld [smem:[#allocation6_spill]] }
0x100b   : > { %s4927_s20 = sld [smem:[#allocation9_spill]] }
0x100f   : > { %p25_p2 = scmp.ge.s32.totalorder %s4925_s21, 4  }
0x1010   : > { %s4929_s19 = smov %s4926_s30 }
0x1011   :  { %27 = sbr.rel (!%p25_p2) target bundleno = 3 (0x3), region = 139 }
0x1016   :  { %3521 = vsyncpa [#allocation3], 1 }
0x1017   :  { %3523 = vsyncpa [#allocation3 + $0x1], 1 }

</bundles_post_ra>
